<compile_context>
chip_gen: v7x
topology: tpu7x:2x2x1
jax: 0.10.0
libtpu: 0.0.40
codegen_flags: <defaults>
</compile_context>

<pallas_src>
import functools

import jax
import jax.numpy as jnp
from jax import lax
from jax.experimental import pallas as pl
from jax.experimental.pallas import tpu as pltpu

EPS = 1e-5  # torch.nn.InstanceNorm2d default eps (affine=False => no scale/bias)
WL = 8      # interior offset on the W (sublane) axis of the padded scratches so the
            # big interior stores are sublane-aligned; halo column sits at WL-1.


# ------------------------- fused DownBlock kernel ----------------------------
def down_block_kernel(x_ref, w1_ref, w2_ref, o_ref, xpad_ref, hpad_ref):
    # x_ref:    (Nb, 2*Hp, Wp, 2*Cin)  W-paired NHWC view of one batch chunk
    # w1_ref:   (9*Cin, Cout)          conv1 weights, row = (kh*3+kw)*Cin + ci
    # w2_ref:   (9*Cout, Cout)         conv2 weights, same layout
    # o_ref:    (Nb, Hp*Wp, Cout)      output chunk (NHWC-flat)
    # xpad_ref: VMEM (Nb, Hp+2, WPAD, Cin)   halo-padded pooled input   (scratch)
    # hpad_ref: VMEM (Nb, Hp+2, WPAD, Cout)  halo-padded conv1 output   (scratch)
    nb, hp2, wpad, cin = xpad_ref.shape
    hp = hp2 - 2
    wp = x_ref.shape[2]
    cout = hpad_ref.shape[-1]

    # ---- zero only the thin halo strips the 3x3 taps actually read
    #      (rows 0 / Hp+1, columns WL-1 / WL+Wp).  Done every step because the
    #      scratch is per-TensorCore: with the batch axis "parallel" on v7x a
    #      program_id()==0 guard would leave the second core uninitialized.
    def zero_halo(ref):
        c = ref.shape[-1]
        zrow = jnp.zeros((nb, 1, wpad, c), ref.dtype)
        ref[:, pl.ds(0, 1), :, :] = zrow
        ref[:, pl.ds(hp + 1, 1), :, :] = zrow
        zcol = jnp.zeros((nb, hp + 2, 1, c), ref.dtype)
        ref[:, :, pl.ds(WL - 1, 1), :] = zcol
        ref[:, :, pl.ds(WL + wp, 1), :] = zcol

    zero_halo(xpad_ref)
    zero_halo(hpad_ref)

    # ---- MaxPool2d(2): W pairing = lane-half maximum (2*Cin on lanes),
    #      H pairing = major-dim reshape + max (lanes/sublanes untouched).
    x = x_ref[...]                                            # (Nb, 2Hp, Wp, 2Cin)
    xw = jnp.maximum(x[..., :cin], x[..., cin:])              # (Nb, 2Hp, Wp, Cin)
    pooled = jnp.max(xw.reshape(nb * hp, 2, wp, cin), axis=1)  # (Nb*Hp, Wp, Cin)
    xpad_ref[:, pl.ds(1, hp), pl.ds(WL, wp), :] = (
        pooled.reshape(nb, hp, wp, cin).astype(xpad_ref.dtype))

    def conv3x3_in_relu(pad_ref, w_ref):
        # 3x3 "same" conv as 9 accumulated shifted-window MXU matmuls (no im2col),
        # then InstanceNorm2d(affine=False) + ReLU.  Stats/accumulation in f32.
        c = pad_ref.shape[-1]
        acc = jnp.zeros((nb * hp * wp, cout), jnp.float32)
        for kh in range(3):
            for kw in range(3):
                win = pad_ref[:, pl.ds(kh, hp), pl.ds(WL - 1 + kw, wp), :]
                win = win.reshape(nb * hp * wp, c)
                wt = w_ref[pl.ds((kh * 3 + kw) * c, c), :]
                acc = acc + jnp.dot(win.astype(wt.dtype), wt,
                                    preferred_element_type=jnp.float32)
        # Per-sample, per-channel stats over spatial positions.
        # (Conv bias would be cancelled exactly here, so it is omitted upstream.)
        accs = acc.reshape(nb, hp * wp, cout)
        mean = jnp.mean(accs, axis=1, keepdims=True)            # (Nb, 1, Cout)
        cen = accs - mean
        var = jnp.mean(cen * cen, axis=1, keepdims=True)
        y = cen * lax.rsqrt(var + EPS)
        return jnp.maximum(y, 0.0)                              # (Nb, Hp*Wp, Cout)

    # ---- conv1 + IN + ReLU; result parked (halo-padded) in VMEM for conv2
    y1 = conv3x3_in_relu(xpad_ref, w1_ref)
    hpad_ref[:, pl.ds(1, hp), pl.ds(WL, wp), :] = (
        y1.reshape(nb, hp, wp, cout).astype(hpad_ref.dtype))

    # ---- conv2 + IN + ReLU
    y2 = conv3x3_in_relu(hpad_ref, w2_ref)
    o_ref[...] = y2.astype(o_ref.dtype)


# --------------------------------- helpers -----------------------------------
def _largest_divisor_leq(n, cap):
    cap = max(1, min(n, cap))
    for d in range(cap, 0, -1):
        if n % d == 0:
            return d
    return 1


def _vmem_padded_bytes(shape, itemsize):
    """Rough VMEM footprint: (sublane, lane) dims padded toward (8, 128) tiles."""
    *major, s, l = shape
    maj = 1
    for m in major:
        maj *= m
    s_pad = -(-s // 8) * 8
    l_pad = -(-l // 128) * 128
    return maj * s_pad * l_pad * itemsize


# --------------------------------- wrapper -----------------------------------
@functools.partial(jax.jit, static_argnames=("compute_dtype",))
def down_block(x_nchw, w1, b1, w2, b2, *, compute_dtype=None):
    """DownBlock forward. x: (N, Cin, H, W); w1: (Cout, Cin, 3, 3); w2: (Cout, Cout, 3, 3).

    b1/b2 are accepted for signature parity with the PyTorch module but are not
    used: InstanceNorm2d(affine=False) cancels a per-channel conv bias exactly.
    compute_dtype (e.g. jnp.bfloat16 — valid on v5e/v6e/v7x, all have bf16-native
    MXUs) applies to the matmul operands and VMEM scratches only; accumulation
    and normalization stay in f32.
    """
    del b1, b2
    n, cin, h, w = x_nchw.shape
    cout = w1.shape[0]
    hp, wp = h // 2, w // 2
    dt = jnp.dtype(compute_dtype) if compute_dtype is not None else x_nchw.dtype
    wpad = WL + wp + 8  # aligned left halo + interior + right halo slack

    # MaxPool2d(2) floor semantics: drop a trailing odd row/col if present.
    x_nchw = x_nchw[:, :, : 2 * hp, : 2 * wp]

    # NCHW -> NHWC, then fold the W pooling pairs onto the lane axis with a free
    # contiguous reshape (so the kernel's W pairing is a lane-half max, not
    # stride-2 sublane loads).
    x = jnp.transpose(x_nchw, (0, 2, 3, 1)).reshape(n, 2 * hp, wp, 2 * cin)

    # Tap-major weight layout: row index = (kh*3 + kw)*Cin + ci  (tiny one-time op)
    w1m = jnp.transpose(w1, (2, 3, 1, 0)).reshape(9 * cin, cout).astype(dt)
    w2m = jnp.transpose(w2, (2, 3, 1, 0)).reshape(9 * cout, cout).astype(dt)

    # Samples per grid step: as many as fit a modest per-step VMEM budget
    # (blocks are double-buffered; lane dims pad to 128 for tiny channel counts).
    itm_x = jnp.dtype(x.dtype).itemsize
    itm_d = jnp.dtype(dt).itemsize
    per_sample = (
        2 * _vmem_padded_bytes((2 * hp, wp, 2 * cin), itm_x)        # input block x2
        + 2 * _vmem_padded_bytes((hp * wp, cout), itm_x)            # output block x2
        + _vmem_padded_bytes((hp + 2, wpad, cin), itm_d)            # xpad scratch
        + _vmem_padded_bytes((hp + 2, wpad, cout), itm_d)           # hpad scratch
        + 6 * _vmem_padded_bytes((hp * wp, cout), 4))               # f32 conv/IN temps
    nb = _largest_divisor_leq(n, (12 * 2 ** 20) // max(per_sample, 1))
    vmem_limit = int(min(64 * 2 ** 20, max(32 * 2 ** 20, 2 * nb * per_sample)))

    out = pl.pallas_call(
        down_block_kernel,
        out_shape=jax.ShapeDtypeStruct((n, hp * wp, cout), x.dtype),
        grid=(n // nb,),
        in_specs=[
            pl.BlockSpec((nb, 2 * hp, wp, 2 * cin), lambda i: (i, 0, 0, 0)),
            pl.BlockSpec((9 * cin, cout), lambda i: (0, 0)),
            pl.BlockSpec((9 * cout, cout), lambda i: (0, 0)),
        ],
        out_specs=pl.BlockSpec((nb, hp * wp, cout), lambda i: (i, 0, 0)),
        scratch_shapes=[
            pltpu.VMEM((nb, hp + 2, wpad, cin), dt),
            pltpu.VMEM((nb, hp + 2, wpad, cout), dt),
        ],
        compiler_params=pltpu.CompilerParams(
            dimension_semantics=("parallel",),
            vmem_limit_bytes=vmem_limit),
    )(x, w1m, w2m)

    # (N, Hp*Wp, Cout) -> NCHW
    return jnp.transpose(out.reshape(n, hp, wp, cout), (0, 3, 1, 2))


# ---------------------------- pure-JAX reference -----------------------------
def _ref_conv_in_relu(x_nchw, w_oihw, b):
    y = lax.conv_general_dilated(
        x_nchw, w_oihw, (1, 1), ((1, 1), (1, 1)),
        dimension_numbers=("NCHW", "OIHW", "NCHW"))
    y = y + b.reshape(1, -1, 1, 1)
    mean = y.mean(axis=(2, 3), keepdims=True)
    var = ((y - mean) ** 2).mean(axis=(2, 3), keepdims=True)
    y = (y - mean) / jnp.sqrt(var + EPS)
    return jnp.maximum(y, 0.0)


def ref_down_block(x_nchw, w1, b1, w2, b2):
    n, c, h, w = x_nchw.shape
    x = x_nchw.reshape(n, c, h // 2, 2, w // 2, 2).max(axis=(3, 5))
    x = _ref_conv_in_relu(x, w1, b1)
    x = _ref_conv_in_relu(x, w2, b2)
    return x


if __name__ == "__main__":
    in_ch, out_ch = 4, 8
    N, H, W = 2, 16, 16

    key = jax.random.PRNGKey(0)
    kx, kw1, kb1, kw2, kb2 = jax.random.split(key, 5)
    x = jax.random.normal(kx, (N, in_ch, H, W), jnp.float32)

    # PyTorch layouts: Conv2d(in_ch, out_ch, 3, padding=1), Conv2d(out_ch, out_ch, 3, padding=1)
    w1 = jax.random.normal(kw1, (out_ch, in_ch, 3, 3), jnp.float32) * 0.1
    b1 = jax.random.normal(kb1, (out_ch,), jnp.float32) * 0.1
    w2 = jax.random.normal(kw2, (out_ch, out_ch, 3, 3), jnp.float32) * 0.1
    b2 = jax.random.normal(kb2, (out_ch,), jnp.float32) * 0.1

    ref = ref_down_block(x, w1, b1, w2, b2)

    # f32 path (primary correctness check)
    out = down_block(x, w1, b1, w2, b2)
    jax.block_until_ready(out)
    assert out.shape == (N, out_ch, H // 2, W // 2), out.shape
    err = float(jnp.max(jnp.abs(out - ref)))
    assert jnp.allclose(out, ref, atol=1e-2, rtol=1e-2), err

    # bf16 compute path (loose tolerance: operands/scratch in bf16, stats in f32)
    out_bf = down_block(x, w1, b1, w2, b2, compute_dtype=jnp.bfloat16)
    jax.block_until_ready(out_bf)
    err_bf = float(jnp.max(jnp.abs(out_bf - ref)))
    assert err_bf < 0.3, err_bf

    print("KERNEL_OK")
</pallas_src>

<mosaic_0001>
module attributes {stable_mosaic.version = 11 : i64} {
  func.func @down_block_kernel(%arg0: i32, %arg1: memref<2x16x8x8xf32, #tpu.memory_space<vmem>>, %arg2: memref<36x8xf32, #tpu.memory_space<vmem>>, %arg3: memref<72x8xf32, #tpu.memory_space<vmem>>, %arg4: memref<2x64x8xf32, #tpu.memory_space<vmem>>, %arg5: memref<2x10x24x4xf32, #tpu.memory_space<vmem>>, %arg6: memref<2x10x24x8xf32, #tpu.memory_space<vmem>>) attributes {dimension_semantics = [#tpu.dimension_semantics<parallel>], iteration_bounds = array<i64: 1>, scalar_prefetch = 0 : i64, scratch_operands = 2 : i64, tpu.core_type = #tpu.core_type<tc>, window_params = [{transform_indices = @transform_0, window_bounds = array<i64: 2, 16, 8, 8>}, {pipeline_mode = #tpu.pipeline_mode<synchronous>, transform_indices = @transform_1, window_bounds = array<i64: 36, 8>}, {pipeline_mode = #tpu.pipeline_mode<synchronous>, transform_indices = @transform_2, window_bounds = array<i64: 72, 8>}, {transform_indices = @transform_3, window_bounds = array<i64: 2, 64, 8>}]} {
    %cst = arith.constant 0.000000e+00 : f32
    %0 = vector.broadcast %cst : f32 to vector<2x1x24x4xf32>
    %c0 = arith.constant 0 : index
    %c0_0 = arith.constant 0 : index
    %c0_1 = arith.constant 0 : index
    %c0_2 = arith.constant 0 : index
    %1 = vector.load %arg5[%c0, %c0_0, %c0_1, %c0_2] : memref<2x10x24x4xf32, #tpu.memory_space<vmem>>, vector<2x1x24x4xf32>
    tpu.vector_store %arg5[%c0, %c0_0, %c0_1, %c0_2], %0 {strides = array<i32>} : memref<2x10x24x4xf32, #tpu.memory_space<vmem>>, vector<2x1x24x4xf32>,
    %c0_3 = arith.constant 0 : index
    %c9 = arith.constant 9 : index
    %c0_4 = arith.constant 0 : index
    %c0_5 = arith.constant 0 : index
    %2 = vector.load %arg5[%c0_3, %c9, %c0_4, %c0_5] : memref<2x10x24x4xf32, #tpu.memory_space<vmem>>, vector<2x1x24x4xf32>
    tpu.vector_store %arg5[%c0_3, %c9, %c0_4, %c0_5], %0 {strides = array<i32>} : memref<2x10x24x4xf32, #tpu.memory_space<vmem>>, vector<2x1x24x4xf32>,
    %cst_6 = arith.constant 0.000000e+00 : f32
    %3 = vector.broadcast %cst_6 : f32 to vector<2x10x1x4xf32>
    %c0_7 = arith.constant 0 : index
    %c0_8 = arith.constant 0 : index
    %c7 = arith.constant 7 : index
    %c0_9 = arith.constant 0 : index
    %4 = vector.load %arg5[%c0_7, %c0_8, %c7, %c0_9] : memref<2x10x24x4xf32, #tpu.memory_space<vmem>>, vector<2x10x1x4xf32>
    tpu.vector_store %arg5[%c0_7, %c0_8, %c7, %c0_9], %3 {strides = array<i32>} : memref<2x10x24x4xf32, #tpu.memory_space<vmem>>, vector<2x10x1x4xf32>,
    %c0_10 = arith.constant 0 : index
    %c0_11 = arith.constant 0 : index
    %c16 = arith.constant 16 : index
    %c0_12 = arith.constant 0 : index
    %5 = vector.load %arg5[%c0_10, %c0_11, %c16, %c0_12] : memref<2x10x24x4xf32, #tpu.memory_space<vmem>>, vector<2x10x1x4xf32>
    tpu.vector_store %arg5[%c0_10, %c0_11, %c16, %c0_12], %3 {strides = array<i32>} : memref<2x10x24x4xf32, #tpu.memory_space<vmem>>, vector<2x10x1x4xf32>,
    %cst_13 = arith.constant 0.000000e+00 : f32
    %6 = vector.broadcast %cst_13 : f32 to vector<2x1x24x8xf32>
    %c0_14 = arith.constant 0 : index
    %c0_15 = arith.constant 0 : index
    %c0_16 = arith.constant 0 : index
    %c0_17 = arith.constant 0 : index
    %7 = vector.load %arg6[%c0_14, %c0_15, %c0_16, %c0_17] : memref<2x10x24x8xf32, #tpu.memory_space<vmem>>, vector<2x1x24x8xf32>
    tpu.vector_store %arg6[%c0_14, %c0_15, %c0_16, %c0_17], %6 {strides = array<i32>} : memref<2x10x24x8xf32, #tpu.memory_space<vmem>>, vector<2x1x24x8xf32>,
    %c0_18 = arith.constant 0 : index
    %c9_19 = arith.constant 9 : index
    %c0_20 = arith.constant 0 : index
    %c0_21 = arith.constant 0 : index
    %8 = vector.load %arg6[%c0_18, %c9_19, %c0_20, %c0_21] : memref<2x10x24x8xf32, #tpu.memory_space<vmem>>, vector<2x1x24x8xf32>
    tpu.vector_store %arg6[%c0_18, %c9_19, %c0_20, %c0_21], %6 {strides = array<i32>} : memref<2x10x24x8xf32, #tpu.memory_space<vmem>>, vector<2x1x24x8xf32>,
    %cst_22 = arith.constant 0.000000e+00 : f32
    %9 = vector.broadcast %cst_22 : f32 to vector<2x10x1x8xf32>
    %c0_23 = arith.constant 0 : index
    %c0_24 = arith.constant 0 : index
    %c7_25 = arith.constant 7 : index
    %c0_26 = arith.constant 0 : index
    %10 = vector.load %arg6[%c0_23, %c0_24, %c7_25, %c0_26] : memref<2x10x24x8xf32, #tpu.memory_space<vmem>>, vector<2x10x1x8xf32>
    tpu.vector_store %arg6[%c0_23, %c0_24, %c7_25, %c0_26], %9 {strides = array<i32>} : memref<2x10x24x8xf32, #tpu.memory_space<vmem>>, vector<2x10x1x8xf32>,
    %c0_27 = arith.constant 0 : index
    %c0_28 = arith.constant 0 : index
    %c16_29 = arith.constant 16 : index
    %c0_30 = arith.constant 0 : index
    %11 = vector.load %arg6[%c0_27, %c0_28, %c16_29, %c0_30] : memref<2x10x24x8xf32, #tpu.memory_space<vmem>>, vector<2x10x1x8xf32>
    tpu.vector_store %arg6[%c0_27, %c0_28, %c16_29, %c0_30], %9 {strides = array<i32>} : memref<2x10x24x8xf32, #tpu.memory_space<vmem>>, vector<2x10x1x8xf32>,
    %c0_31 = arith.constant 0 : index
    %c0_32 = arith.constant 0 : index
    %c0_33 = arith.constant 0 : index
    %c0_34 = arith.constant 0 : index
    %12 = vector.load %arg1[%c0_31, %c0_32, %c0_33, %c0_34] : memref<2x16x8x8xf32, #tpu.memory_space<vmem>>, vector<2x16x8x8xf32>
    %13 = vector.extract_strided_slice %12 {offsets = [0, 0, 0, 0], sizes = [2, 16, 8, 4], strides = [1, 1, 1, 1]} : vector<2x16x8x8xf32> to vector<2x16x8x4xf32>
    %14 = vector.extract_strided_slice %12 {offsets = [0, 0, 0, 4], sizes = [2, 16, 8, 4], strides = [1, 1, 1, 1]} : vector<2x16x8x8xf32> to vector<2x16x8x4xf32>
    %15 = arith.maximumf %13, %14 : vector<2x16x8x4xf32>
    %16 = vector.shape_cast %15 : vector<2x16x8x4xf32> to vector<16x2x8x4xf32>
    %cst_35 = arith.constant dense<0xFF800000> : vector<16x8x4xf32>
    %17 = vector.multi_reduction <maximumf>, %16, %cst_35 [1] : vector<16x2x8x4xf32> to vector<16x8x4xf32>
    %18 = vector.shape_cast %17 : vector<16x8x4xf32> to vector<2x8x8x4xf32>
    %c0_36 = arith.constant 0 : index
    %c1 = arith.constant 1 : index
    %c8 = arith.constant 8 : index
    %c0_37 = arith.constant 0 : index
    %19 = vector.load %arg5[%c0_36, %c1, %c8, %c0_37] : memref<2x10x24x4xf32, #tpu.memory_space<vmem>>, vector<2x8x8x4xf32>
    tpu.vector_store %arg5[%c0_36, %c1, %c8, %c0_37], %18 {strides = array<i32>} : memref<2x10x24x4xf32, #tpu.memory_space<vmem>>, vector<2x8x8x4xf32>,
    %cst_38 = arith.constant 0.000000e+00 : f32
    %20 = vector.broadcast %cst_38 : f32 to vector<128x8xf32>
    %c0_39 = arith.constant 0 : index
    %c0_40 = arith.constant 0 : index
    %c7_41 = arith.constant 7 : index
    %c0_42 = arith.constant 0 : index
    %21 = vector.load %arg5[%c0_39, %c0_40, %c7_41, %c0_42] : memref<2x10x24x4xf32, #tpu.memory_space<vmem>>, vector<2x8x8x4xf32>
    %22 = vector.shape_cast %21 : vector<2x8x8x4xf32> to vector<128x4xf32>
    %c0_43 = arith.constant 0 : index
    %c0_44 = arith.constant 0 : index
    %23 = vector.load %arg2[%c0_43, %c0_44] : memref<36x8xf32, #tpu.memory_space<vmem>>, vector<4x8xf32>
    %cst_45 = arith.constant dense<0.000000e+00> : vector<128x8xf32>
    %24 = tpu.matmul %22, %23, %cst_45 {dimension_numbers = #tpu.dot_dimension_numbers<[1], [0], [0], [1], [0, 0, 1, 1], [], []>} : vector<128x4xf32>, vector<4x8xf32>, vector<128x8xf32> -> vector<128x8xf32>
    %25 = arith.addf %20, %24 : vector<128x8xf32>
    %c0_46 = arith.constant 0 : index
    %c0_47 = arith.constant 0 : index
    %c8_48 = arith.constant 8 : index
    %c0_49 = arith.constant 0 : index
    %26 = vector.load %arg5[%c0_46, %c0_47, %c8_48, %c0_49] : memref<2x10x24x4xf32, #tpu.memory_space<vmem>>, vector<2x8x8x4xf32>
    %27 = vector.shape_cast %26 : vector<2x8x8x4xf32> to vector<128x4xf32>
    %c4 = arith.constant 4 : index
    %c0_50 = arith.constant 0 : index
    %28 = vector.load %arg2[%c4, %c0_50] : memref<36x8xf32, #tpu.memory_space<vmem>>, vector<4x8xf32>
    %cst_51 = arith.constant dense<0.000000e+00> : vector<128x8xf32>
    %29 = tpu.matmul %27, %28, %cst_51 {dimension_numbers = #tpu.dot_dimension_numbers<[1], [0], [0], [1], [0, 0, 1, 1], [], []>} : vector<128x4xf32>, vector<4x8xf32>, vector<128x8xf32> -> vector<128x8xf32>
    %30 = arith.addf %25, %29 : vector<128x8xf32>
    %c0_52 = arith.constant 0 : index
    %c0_53 = arith.constant 0 : index
    %c9_54 = arith.constant 9 : index
    %c0_55 = arith.constant 0 : index
    %31 = vector.load %arg5[%c0_52, %c0_53, %c9_54, %c0_55] : memref<2x10x24x4xf32, #tpu.memory_space<vmem>>, vector<2x8x8x4xf32>
    %32 = vector.shape_cast %31 : vector<2x8x8x4xf32> to vector<128x4xf32>
    %c8_56 = arith.constant 8 : index
    %c0_57 = arith.constant 0 : index
    %33 = vector.load %arg2[%c8_56, %c0_57] : memref<36x8xf32, #tpu.memory_space<vmem>>, vector<4x8xf32>
    %cst_58 = arith.constant dense<0.000000e+00> : vector<128x8xf32>
    %34 = tpu.matmul %32, %33, %cst_58 {dimension_numbers = #tpu.dot_dimension_numbers<[1], [0], [0], [1], [0, 0, 1, 1], [], []>} : vector<128x4xf32>, vector<4x8xf32>, vector<128x8xf32> -> vector<128x8xf32>
    %35 = arith.addf %30, %34 : vector<128x8xf32>
    %c0_59 = arith.constant 0 : index
    %c1_60 = arith.constant 1 : index
    %c7_61 = arith.constant 7 : index
    %c0_62 = arith.constant 0 : index
    %36 = vector.load %arg5[%c0_59, %c1_60, %c7_61, %c0_62] : memref<2x10x24x4xf32, #tpu.memory_space<vmem>>, vector<2x8x8x4xf32>
    %37 = vector.shape_cast %36 : vector<2x8x8x4xf32> to vector<128x4xf32>
    %c12 = arith.constant 12 : index
    %c0_63 = arith.constant 0 : index
    %38 = vector.load %arg2[%c12, %c0_63] : memref<36x8xf32, #tpu.memory_space<vmem>>, vector<4x8xf32>
    %cst_64 = arith.constant dense<0.000000e+00> : vector<128x8xf32>
    %39 = tpu.matmul %37, %38, %cst_64 {dimension_numbers = #tpu.dot_dimension_numbers<[1], [0], [0], [1], [0, 0, 1, 1], [], []>} : vector<128x4xf32>, vector<4x8xf32>, vector<128x8xf32> -> vector<128x8xf32>
    %40 = arith.addf %35, %39 : vector<128x8xf32>
    %c0_65 = arith.constant 0 : index
    %c1_66 = arith.constant 1 : index
    %c8_67 = arith.constant 8 : index
    %c0_68 = arith.constant 0 : index
    %41 = vector.load %arg5[%c0_65, %c1_66, %c8_67, %c0_68] : memref<2x10x24x4xf32, #tpu.memory_space<vmem>>, vector<2x8x8x4xf32>
    %42 = vector.shape_cast %41 : vector<2x8x8x4xf32> to vector<128x4xf32>
    %c16_69 = arith.constant 16 : index
    %c0_70 = arith.constant 0 : index
    %43 = vector.load %arg2[%c16_69, %c0_70] : memref<36x8xf32, #tpu.memory_space<vmem>>, vector<4x8xf32>
    %cst_71 = arith.constant dense<0.000000e+00> : vector<128x8xf32>
    %44 = tpu.matmul %42, %43, %cst_71 {dimension_numbers = #tpu.dot_dimension_numbers<[1], [0], [0], [1], [0, 0, 1, 1], [], []>} : vector<128x4xf32>, vector<4x8xf32>, vector<128x8xf32> -> vector<128x8xf32>
    %45 = arith.addf %40, %44 : vector<128x8xf32>
    %c0_72 = arith.constant 0 : index
    %c1_73 = arith.constant 1 : index
    %c9_74 = arith.constant 9 : index
    %c0_75 = arith.constant 0 : index
    %46 = vector.load %arg5[%c0_72, %c1_73, %c9_74, %c0_75] : memref<2x10x24x4xf32, #tpu.memory_space<vmem>>, vector<2x8x8x4xf32>
    %47 = vector.shape_cast %46 : vector<2x8x8x4xf32> to vector<128x4xf32>
    %c20 = arith.constant 20 : index
    %c0_76 = arith.constant 0 : index
    %48 = vector.load %arg2[%c20, %c0_76] : memref<36x8xf32, #tpu.memory_space<vmem>>, vector<4x8xf32>
    %cst_77 = arith.constant dense<0.000000e+00> : vector<128x8xf32>
    %49 = tpu.matmul %47, %48, %cst_77 {dimension_numbers = #tpu.dot_dimension_numbers<[1], [0], [0], [1], [0, 0, 1, 1], [], []>} : vector<128x4xf32>, vector<4x8xf32>, vector<128x8xf32> -> vector<128x8xf32>
    %50 = arith.addf %45, %49 : vector<128x8xf32>
    %c0_78 = arith.constant 0 : index
    %c2 = arith.constant 2 : index
    %c7_79 = arith.constant 7 : index
    %c0_80 = arith.constant 0 : index
    %51 = vector.load %arg5[%c0_78, %c2, %c7_79, %c0_80] : memref<2x10x24x4xf32, #tpu.memory_space<vmem>>, vector<2x8x8x4xf32>
    %52 = vector.shape_cast %51 : vector<2x8x8x4xf32> to vector<128x4xf32>
    %c24 = arith.constant 24 : index
    %c0_81 = arith.constant 0 : index
    %53 = vector.load %arg2[%c24, %c0_81] : memref<36x8xf32, #tpu.memory_space<vmem>>, vector<4x8xf32>
    %cst_82 = arith.constant dense<0.000000e+00> : vector<128x8xf32>
    %54 = tpu.matmul %52, %53, %cst_82 {dimension_numbers = #tpu.dot_dimension_numbers<[1], [0], [0], [1], [0, 0, 1, 1], [], []>} : vector<128x4xf32>, vector<4x8xf32>, vector<128x8xf32> -> vector<128x8xf32>
    %55 = arith.addf %50, %54 : vector<128x8xf32>
    %c0_83 = arith.constant 0 : index
    %c2_84 = arith.constant 2 : index
    %c8_85 = arith.constant 8 : index
    %c0_86 = arith.constant 0 : index
    %56 = vector.load %arg5[%c0_83, %c2_84, %c8_85, %c0_86] : memref<2x10x24x4xf32, #tpu.memory_space<vmem>>, vector<2x8x8x4xf32>
    %57 = vector.shape_cast %56 : vector<2x8x8x4xf32> to vector<128x4xf32>
    %c28 = arith.constant 28 : index
    %c0_87 = arith.constant 0 : index
    %58 = vector.load %arg2[%c28, %c0_87] : memref<36x8xf32, #tpu.memory_space<vmem>>, vector<4x8xf32>
    %cst_88 = arith.constant dense<0.000000e+00> : vector<128x8xf32>
    %59 = tpu.matmul %57, %58, %cst_88 {dimension_numbers = #tpu.dot_dimension_numbers<[1], [0], [0], [1], [0, 0, 1, 1], [], []>} : vector<128x4xf32>, vector<4x8xf32>, vector<128x8xf32> -> vector<128x8xf32>
    %60 = arith.addf %55, %59 : vector<128x8xf32>
    %c0_89 = arith.constant 0 : index
    %c2_90 = arith.constant 2 : index
    %c9_91 = arith.constant 9 : index
    %c0_92 = arith.constant 0 : index
    %61 = vector.load %arg5[%c0_89, %c2_90, %c9_91, %c0_92] : memref<2x10x24x4xf32, #tpu.memory_space<vmem>>, vector<2x8x8x4xf32>
    %62 = vector.shape_cast %61 : vector<2x8x8x4xf32> to vector<128x4xf32>
    %c32 = arith.constant 32 : index
    %c0_93 = arith.constant 0 : index
    %63 = vector.load %arg2[%c32, %c0_93] : memref<36x8xf32, #tpu.memory_space<vmem>>, vector<4x8xf32>
    %cst_94 = arith.constant dense<0.000000e+00> : vector<128x8xf32>
    %64 = tpu.matmul %62, %63, %cst_94 {dimension_numbers = #tpu.dot_dimension_numbers<[1], [0], [0], [1], [0, 0, 1, 1], [], []>} : vector<128x4xf32>, vector<4x8xf32>, vector<128x8xf32> -> vector<128x8xf32>
    %65 = arith.addf %60, %64 : vector<128x8xf32>
    %66 = vector.shape_cast %65 : vector<128x8xf32> to vector<2x64x8xf32>
    %cst_95 = arith.constant dense<0.000000e+00> : vector<2x8xf32>
    %67 = vector.multi_reduction <add>, %66, %cst_95 [1] : vector<2x64x8xf32> to vector<2x8xf32>
    %68 = vector.shape_cast %67 : vector<2x8xf32> to vector<2x1x8xf32>
    %cst_96 = arith.constant 6.400000e+01 : f32
    %69 = vector.broadcast %cst_96 : f32 to vector<2x1x8xf32>
    %70 = arith.divf %68, %69 : vector<2x1x8xf32>
    %71 = vector.broadcast %70 : vector<2x1x8xf32> to vector<2x64x8xf32>
    %72 = arith.subf %66, %71 : vector<2x64x8xf32>
    %73 = arith.mulf %72, %72 : vector<2x64x8xf32>
    %cst_97 = arith.constant dense<0.000000e+00> : vector<2x8xf32>
    %74 = vector.multi_reduction <add>, %73, %cst_97 [1] : vector<2x64x8xf32> to vector<2x8xf32>
    %75 = vector.shape_cast %74 : vector<2x8xf32> to vector<2x1x8xf32>
    %cst_98 = arith.constant 6.400000e+01 : f32
    %76 = vector.broadcast %cst_98 : f32 to vector<2x1x8xf32>
    %77 = arith.divf %75, %76 : vector<2x1x8xf32>
    %cst_99 = arith.constant 9.99999974E-6 : f32
    %78 = vector.broadcast %cst_99 : f32 to vector<2x1x8xf32>
    %79 = arith.addf %77, %78 : vector<2x1x8xf32>
    %80 = math.rsqrt %79 : vector<2x1x8xf32>
    %81 = vector.broadcast %80 : vector<2x1x8xf32> to vector<2x64x8xf32>
    %82 = arith.mulf %72, %81 : vector<2x64x8xf32>
    %cst_100 = arith.constant 0.000000e+00 : f32
    %83 = vector.broadcast %cst_100 : f32 to vector<2x64x8xf32>
    %84 = arith.maximumf %82, %83 : vector<2x64x8xf32>
    %85 = vector.shape_cast %84 : vector<2x64x8xf32> to vector<2x8x8x8xf32>
    %c0_101 = arith.constant 0 : index
    %c1_102 = arith.constant 1 : index
    %c8_103 = arith.constant 8 : index
    %c0_104 = arith.constant 0 : index
    %86 = vector.load %arg6[%c0_101, %c1_102, %c8_103, %c0_104] : memref<2x10x24x8xf32, #tpu.memory_space<vmem>>, vector<2x8x8x8xf32>
    tpu.vector_store %arg6[%c0_101, %c1_102, %c8_103, %c0_104], %85 {strides = array<i32>} : memref<2x10x24x8xf32, #tpu.memory_space<vmem>>, vector<2x8x8x8xf32>,
    %cst_105 = arith.constant 0.000000e+00 : f32
    %87 = vector.broadcast %cst_105 : f32 to vector<128x8xf32>
    %c0_106 = arith.constant 0 : index
    %c0_107 = arith.constant 0 : index
    %c7_108 = arith.constant 7 : index
    %c0_109 = arith.constant 0 : index
    %88 = vector.load %arg6[%c0_106, %c0_107, %c7_108, %c0_109] : memref<2x10x24x8xf32, #tpu.memory_space<vmem>>, vector<2x8x8x8xf32>
    %89 = vector.shape_cast %88 : vector<2x8x8x8xf32> to vector<128x8xf32>
    %c0_110 = arith.constant 0 : index
    %c0_111 = arith.constant 0 : index
    %90 = vector.load %arg3[%c0_110, %c0_111] : memref<72x8xf32, #tpu.memory_space<vmem>>, vector<8x8xf32>
    %cst_112 = arith.constant dense<0.000000e+00> : vector<128x8xf32>
    %91 = tpu.matmul %89, %90, %cst_112 {dimension_numbers = #tpu.dot_dimension_numbers<[1], [0], [0], [1], [0, 0, 1, 1], [], []>} : vector<128x8xf32>, vector<8x8xf32>, vector<128x8xf32> -> vector<128x8xf32>
    %92 = arith.addf %87, %91 : vector<128x8xf32>
    %c0_113 = arith.constant 0 : index
    %c0_114 = arith.constant 0 : index
    %c8_115 = arith.constant 8 : index
    %c0_116 = arith.constant 0 : index
    %93 = vector.load %arg6[%c0_113, %c0_114, %c8_115, %c0_116] : memref<2x10x24x8xf32, #tpu.memory_space<vmem>>, vector<2x8x8x8xf32>
    %94 = vector.shape_cast %93 : vector<2x8x8x8xf32> to vector<128x8xf32>
    %c8_117 = arith.constant 8 : index
    %c0_118 = arith.constant 0 : index
    %95 = vector.load %arg3[%c8_117, %c0_118] : memref<72x8xf32, #tpu.memory_space<vmem>>, vector<8x8xf32>
    %cst_119 = arith.constant dense<0.000000e+00> : vector<128x8xf32>
    %96 = tpu.matmul %94, %95, %cst_119 {dimension_numbers = #tpu.dot_dimension_numbers<[1], [0], [0], [1], [0, 0, 1, 1], [], []>} : vector<128x8xf32>, vector<8x8xf32>, vector<128x8xf32> -> vector<128x8xf32>
    %97 = arith.addf %92, %96 : vector<128x8xf32>
    %c0_120 = arith.constant 0 : index
    %c0_121 = arith.constant 0 : index
    %c9_122 = arith.constant 9 : index
    %c0_123 = arith.constant 0 : index
    %98 = vector.load %arg6[%c0_120, %c0_121, %c9_122, %c0_123] : memref<2x10x24x8xf32, #tpu.memory_space<vmem>>, vector<2x8x8x8xf32>
    %99 = vector.shape_cast %98 : vector<2x8x8x8xf32> to vector<128x8xf32>
    %c16_124 = arith.constant 16 : index
    %c0_125 = arith.constant 0 : index
    %100 = vector.load %arg3[%c16_124, %c0_125] : memref<72x8xf32, #tpu.memory_space<vmem>>, vector<8x8xf32>
    %cst_126 = arith.constant dense<0.000000e+00> : vector<128x8xf32>
    %101 = tpu.matmul %99, %100, %cst_126 {dimension_numbers = #tpu.dot_dimension_numbers<[1], [0], [0], [1], [0, 0, 1, 1], [], []>} : vector<128x8xf32>, vector<8x8xf32>, vector<128x8xf32> -> vector<128x8xf32>
    %102 = arith.addf %97, %101 : vector<128x8xf32>
    %c0_127 = arith.constant 0 : index
    %c1_128 = arith.constant 1 : index
    %c7_129 = arith.constant 7 : index
    %c0_130 = arith.constant 0 : index
    %103 = vector.load %arg6[%c0_127, %c1_128, %c7_129, %c0_130] : memref<2x10x24x8xf32, #tpu.memory_space<vmem>>, vector<2x8x8x8xf32>
    %104 = vector.shape_cast %103 : vector<2x8x8x8xf32> to vector<128x8xf32>
    %c24_131 = arith.constant 24 : index
    %c0_132 = arith.constant 0 : index
    %105 = vector.load %arg3[%c24_131, %c0_132] : memref<72x8xf32, #tpu.memory_space<vmem>>, vector<8x8xf32>
    %cst_133 = arith.constant dense<0.000000e+00> : vector<128x8xf32>
    %106 = tpu.matmul %104, %105, %cst_133 {dimension_numbers = #tpu.dot_dimension_numbers<[1], [0], [0], [1], [0, 0, 1, 1], [], []>} : vector<128x8xf32>, vector<8x8xf32>, vector<128x8xf32> -> vector<128x8xf32>
    %107 = arith.addf %102, %106 : vector<128x8xf32>
    %c0_134 = arith.constant 0 : index
    %c1_135 = arith.constant 1 : index
    %c8_136 = arith.constant 8 : index
    %c0_137 = arith.constant 0 : index
    %108 = vector.load %arg6[%c0_134, %c1_135, %c8_136, %c0_137] : memref<2x10x24x8xf32, #tpu.memory_space<vmem>>, vector<2x8x8x8xf32>
    %109 = vector.shape_cast %108 : vector<2x8x8x8xf32> to vector<128x8xf32>
    %c32_138 = arith.constant 32 : index
    %c0_139 = arith.constant 0 : index
    %110 = vector.load %arg3[%c32_138, %c0_139] : memref<72x8xf32, #tpu.memory_space<vmem>>, vector<8x8xf32>
    %cst_140 = arith.constant dense<0.000000e+00> : vector<128x8xf32>
    %111 = tpu.matmul %109, %110, %cst_140 {dimension_numbers = #tpu.dot_dimension_numbers<[1], [0], [0], [1], [0, 0, 1, 1], [], []>} : vector<128x8xf32>, vector<8x8xf32>, vector<128x8xf32> -> vector<128x8xf32>
    %112 = arith.addf %107, %111 : vector<128x8xf32>
    %c0_141 = arith.constant 0 : index
    %c1_142 = arith.constant 1 : index
    %c9_143 = arith.constant 9 : index
    %c0_144 = arith.constant 0 : index
    %113 = vector.load %arg6[%c0_141, %c1_142, %c9_143, %c0_144] : memref<2x10x24x8xf32, #tpu.memory_space<vmem>>, vector<2x8x8x8xf32>
    %114 = vector.shape_cast %113 : vector<2x8x8x8xf32> to vector<128x8xf32>
    %c40 = arith.constant 40 : index
    %c0_145 = arith.constant 0 : index
    %115 = vector.load %arg3[%c40, %c0_145] : memref<72x8xf32, #tpu.memory_space<vmem>>, vector<8x8xf32>
    %cst_146 = arith.constant dense<0.000000e+00> : vector<128x8xf32>
    %116 = tpu.matmul %114, %115, %cst_146 {dimension_numbers = #tpu.dot_dimension_numbers<[1], [0], [0], [1], [0, 0, 1, 1], [], []>} : vector<128x8xf32>, vector<8x8xf32>, vector<128x8xf32> -> vector<128x8xf32>
    %117 = arith.addf %112, %116 : vector<128x8xf32>
    %c0_147 = arith.constant 0 : index
    %c2_148 = arith.constant 2 : index
    %c7_149 = arith.constant 7 : index
    %c0_150 = arith.constant 0 : index
    %118 = vector.load %arg6[%c0_147, %c2_148, %c7_149, %c0_150] : memref<2x10x24x8xf32, #tpu.memory_space<vmem>>, vector<2x8x8x8xf32>
    %119 = vector.shape_cast %118 : vector<2x8x8x8xf32> to vector<128x8xf32>
    %c48 = arith.constant 48 : index
    %c0_151 = arith.constant 0 : index
    %120 = vector.load %arg3[%c48, %c0_151] : memref<72x8xf32, #tpu.memory_space<vmem>>, vector<8x8xf32>
    %cst_152 = arith.constant dense<0.000000e+00> : vector<128x8xf32>
    %121 = tpu.matmul %119, %120, %cst_152 {dimension_numbers = #tpu.dot_dimension_numbers<[1], [0], [0], [1], [0, 0, 1, 1], [], []>} : vector<128x8xf32>, vector<8x8xf32>, vector<128x8xf32> -> vector<128x8xf32>
    %122 = arith.addf %117, %121 : vector<128x8xf32>
    %c0_153 = arith.constant 0 : index
    %c2_154 = arith.constant 2 : index
    %c8_155 = arith.constant 8 : index
    %c0_156 = arith.constant 0 : index
    %123 = vector.load %arg6[%c0_153, %c2_154, %c8_155, %c0_156] : memref<2x10x24x8xf32, #tpu.memory_space<vmem>>, vector<2x8x8x8xf32>
    %124 = vector.shape_cast %123 : vector<2x8x8x8xf32> to vector<128x8xf32>
    %c56 = arith.constant 56 : index
    %c0_157 = arith.constant 0 : index
    %125 = vector.load %arg3[%c56, %c0_157] : memref<72x8xf32, #tpu.memory_space<vmem>>, vector<8x8xf32>
    %cst_158 = arith.constant dense<0.000000e+00> : vector<128x8xf32>
    %126 = tpu.matmul %124, %125, %cst_158 {dimension_numbers = #tpu.dot_dimension_numbers<[1], [0], [0], [1], [0, 0, 1, 1], [], []>} : vector<128x8xf32>, vector<8x8xf32>, vector<128x8xf32> -> vector<128x8xf32>
    %127 = arith.addf %122, %126 : vector<128x8xf32>
    %c0_159 = arith.constant 0 : index
    %c2_160 = arith.constant 2 : index
    %c9_161 = arith.constant 9 : index
    %c0_162 = arith.constant 0 : index
    %128 = vector.load %arg6[%c0_159, %c2_160, %c9_161, %c0_162] : memref<2x10x24x8xf32, #tpu.memory_space<vmem>>, vector<2x8x8x8xf32>
    %129 = vector.shape_cast %128 : vector<2x8x8x8xf32> to vector<128x8xf32>
    %c64 = arith.constant 64 : index
    %c0_163 = arith.constant 0 : index
    %130 = vector.load %arg3[%c64, %c0_163] : memref<72x8xf32, #tpu.memory_space<vmem>>, vector<8x8xf32>
    %cst_164 = arith.constant dense<0.000000e+00> : vector<128x8xf32>
    %131 = tpu.matmul %129, %130, %cst_164 {dimension_numbers = #tpu.dot_dimension_numbers<[1], [0], [0], [1], [0, 0, 1, 1], [], []>} : vector<128x8xf32>, vector<8x8xf32>, vector<128x8xf32> -> vector<128x8xf32>
    %132 = arith.addf %127, %131 : vector<128x8xf32>
    %133 = vector.shape_cast %132 : vector<128x8xf32> to vector<2x64x8xf32>
    %cst_165 = arith.constant dense<0.000000e+00> : vector<2x8xf32>
    %134 = vector.multi_reduction <add>, %133, %cst_165 [1] : vector<2x64x8xf32> to vector<2x8xf32>
    %135 = vector.shape_cast %134 : vector<2x8xf32> to vector<2x1x8xf32>
    %cst_166 = arith.constant 6.400000e+01 : f32
    %136 = vector.broadcast %cst_166 : f32 to vector<2x1x8xf32>
    %137 = arith.divf %135, %136 : vector<2x1x8xf32>
    %138 = vector.broadcast %137 : vector<2x1x8xf32> to vector<2x64x8xf32>
    %139 = arith.subf %133, %138 : vector<2x64x8xf32>
    %140 = arith.mulf %139, %139 : vector<2x64x8xf32>
    %cst_167 = arith.constant dense<0.000000e+00> : vector<2x8xf32>
    %141 = vector.multi_reduction <add>, %140, %cst_167 [1] : vector<2x64x8xf32> to vector<2x8xf32>
    %142 = vector.shape_cast %141 : vector<2x8xf32> to vector<2x1x8xf32>
    %cst_168 = arith.constant 6.400000e+01 : f32
    %143 = vector.broadcast %cst_168 : f32 to vector<2x1x8xf32>
    %144 = arith.divf %142, %143 : vector<2x1x8xf32>
    %cst_169 = arith.constant 9.99999974E-6 : f32
    %145 = vector.broadcast %cst_169 : f32 to vector<2x1x8xf32>
    %146 = arith.addf %144, %145 : vector<2x1x8xf32>
    %147 = math.rsqrt %146 : vector<2x1x8xf32>
    %148 = vector.broadcast %147 : vector<2x1x8xf32> to vector<2x64x8xf32>
    %149 = arith.mulf %139, %148 : vector<2x64x8xf32>
    %cst_170 = arith.constant 0.000000e+00 : f32
    %150 = vector.broadcast %cst_170 : f32 to vector<2x64x8xf32>
    %151 = arith.maximumf %149, %150 : vector<2x64x8xf32>
    %c0_171 = arith.constant 0 : index
    %c0_172 = arith.constant 0 : index
    %c0_173 = arith.constant 0 : index
    %152 = vector.load %arg4[%c0_171, %c0_172, %c0_173] : memref<2x64x8xf32, #tpu.memory_space<vmem>>, vector<2x64x8xf32>
    tpu.vector_store %arg4[%c0_171, %c0_172, %c0_173], %151 {strides = array<i32>} : memref<2x64x8xf32, #tpu.memory_space<vmem>>, vector<2x64x8xf32>,
    return
  }
  func.func @transform_0(%arg0: i32) -> (i32, i32, i32, i32) {
    %c0_i32 = arith.constant 0 : i32
    %c0_i32_0 = arith.constant 0 : i32
    %c0_i32_1 = arith.constant 0 : i32
    %c0_i32_2 = arith.constant 0 : i32
    return %arg0, %c0_i32, %c0_i32_0, %c0_i32_1 : i32, i32, i32, i32
  }
  func.func @transform_1(%arg0: i32) -> (i32, i32) {
    %c0_i32 = arith.constant 0 : i32
    %c0_i32_0 = arith.constant 0 : i32
    %c0_i32_1 = arith.constant 0 : i32
    return %c0_i32, %c0_i32_0 : i32, i32
  }
  func.func @transform_2(%arg0: i32) -> (i32, i32) {
    %c0_i32 = arith.constant 0 : i32
    %c0_i32_0 = arith.constant 0 : i32
    %c0_i32_1 = arith.constant 0 : i32
    return %c0_i32, %c0_i32_0 : i32, i32
  }
  func.func @transform_3(%arg0: i32) -> (i32, i32, i32) {
    %c0_i32 = arith.constant 0 : i32
    %c0_i32_0 = arith.constant 0 : i32
    %c0_i32_1 = arith.constant 0 : i32
    return %arg0, %c0_i32, %c0_i32_0 : i32, i32, i32
  }
}

</mosaic_0001>

<bundles_post_ra>
// kernel: down_block.1
= control target key start
LH: loop header
LB: loop body
LE: loop exit
PB: predicated region body
PF: predicated region fallthrough
CT: control target
= control target key end

     0   :  { %vm14_vm0 = vcmask 31744   ;;  %vm28_vm1 = vcmask 24576   ;;  %v6102_v2 = vmov 0.0   ;;  %s6103_s16 = smov 124   ;;  %vm463_vm2 = vcmask 1043456   ;;  %s7772_s0 = inlined_call_operand.vmem [shape: f32[2,16,8,8], index: 0, kind: input, shape index: {}]   ;;  %s7773_s1 = inlined_call_operand.vmem [shape: f32[36,8], index: 1, kind: input, shape index: {}]   ;;  %s7774_s2 = inlined_call_operand.vmem [shape: f32[72,8], index: 2, kind: input, shape index: {}]   ;;  %s7775_s3 = inlined_call_operand.vmem [shape: f32[2,64,8], index: 3, kind: output, shape index: {}]  }
   0x1   :  { %v6127_v0 = vld [vmem:[%s7772_s0 + $0x10] sm:$0xff]  ;;  %v6132_v1 = vld [vmem:[%s7772_s0] sm:$0xff]  ;;  %16 = vst.msk [vmem:[#allocation2 + $0x8] sm:$0xff] %vm14_vm0, %v6102_v2  ;;  %15 = vst.msk [vmem:[#allocation2] sm:$0xff] %vm14_vm0, %v6102_v2  ;;  %vm69_vm3 = vcmask 64512   ;;  %vm83_vm4 = vcmask 57344  }
   0x2   :  { %17 = vst.msk [vmem:[#allocation2 + $0x10] sm:$0xff] %vm14_vm0, %v6102_v2  ;;  %18 = vst.msk [vmem:[#allocation2 + $0xf0] sm:$0xff] %vm14_vm0, %v6102_v2  ;;  %192 = vrot.lane.b32.xlu1 %v6127_v0, %s6103_s16  ;;  %188 = vrot.lane.b32.xlu0 %v6132_v1, %s6103_s16  ;;  %v6245_v3 = vld [vmem:[%s7772_s0 + $0x18] sm:$0xff]  ;;  %v6250_v4 = vld [vmem:[%s7772_s0 + $0x8] sm:$0xff] }
   0x3   :  { %19 = vst.msk [vmem:[#allocation2 + $0xf8] sm:$0xff] %vm14_vm0, %v6102_v2  ;;  %20 = vst.msk [vmem:[#allocation2 + $0x100] sm:$0xff] %vm14_vm0, %v6102_v2  ;;  %v6259_v5 = vld [vmem:[%s7772_s0 + $0x28] sm:$0xff]  ;;  %v6264_v6 = vld [vmem:[%s7772_s0 + $0x20] sm:$0xff] }
   0x4   :  { %22 = vst.msk [vmem:[#allocation2 + $0xd8] sm:$0xff] %vm14_vm0, %v6102_v2  ;;  %23 = vst.msk [vmem:[#allocation2 + $0xe0] sm:$0xff] %vm14_vm0, %v6102_v2  ;;  %v6273_v8 = vld [vmem:[%s7772_s0 + $0x38] sm:$0xff]  ;;  %v6278_v9 = vld [vmem:[%s7772_s0 + $0x30] sm:$0xff] }
   0x5   :  { %24 = vst.msk [vmem:[#allocation2 + $0xe8] sm:$0xff] %vm14_vm0, %v6102_v2  ;;  %25 = vst.msk [vmem:[#allocation2 + $0x1c8] sm:$0xff] %vm14_vm0, %v6102_v2  ;;  %v414_v10 = vld [vmem:[%s7773_s1 + $0x4] sm:$0xf]  ;;  %v6293_v11 = vld [vmem:[%s7772_s0 + $0x48] sm:$0xff] }
   0x6   :  { %26 = vst.msk [vmem:[#allocation2 + $0x1d0] sm:$0xff] %vm14_vm0, %v6102_v2  ;;  %27 = vst.msk [vmem:[#allocation2 + $0x1d8] sm:$0xff] %vm14_vm0, %v6102_v2  ;;  %194 = vrot.lane.b32.xlu1 %v6245_v3, %s6103_s16  ;;  %190 = vrot.lane.b32.xlu0 %v6250_v4, %s6103_s16  ;;  %v6298_v12 = vld [vmem:[%s7772_s0 + $0x40] sm:$0xff]  ;;  %v6307_v13 = vld [vmem:[%s7772_s0 + $0x58] sm:$0xff] }
   0x7   :  { %30 = vst.msk [vmem:[#allocation2 + $0x1f] sm:$0x1] %vm28_vm1, %v6102_v2  ;;  %31 = vst.msk [vmem:[#allocation2 + $0x37] sm:$0x1] %vm28_vm1, %v6102_v2  ;;  %5368 = vmatprep.subr.msk.mxu0 %vm463_vm2, %v414_v10  ;;  %v6312_v14 = vld [vmem:[%s7772_s0 + $0x50] sm:$0xff]  ;;  %v6321_v15 = vld [vmem:[%s7772_s0 + $0x68] sm:$0xff] }
   0x8   :  { %32 = vst.msk [vmem:[#allocation2 + $0x4f] sm:$0x1] %vm28_vm1, %v6102_v2  ;;  %33 = vst.msk [vmem:[#allocation2 + $0x67] sm:$0x1] %vm28_vm1, %v6102_v2  ;;  %v398_v7 = vld [vmem:[#allocation2 + $0x8] sm:$0xff]  ;;  %5369 = vmatpush3.msk.msra.mxu0 %vm463_vm2, %v414_v10  ;;  %v6326_v16 = vld [vmem:[%s7772_s0 + $0x60] sm:$0xff] }
   0x9   :  { %34 = vst.msk [vmem:[#allocation2 + $0x7f] sm:$0x1] %vm28_vm1, %v6102_v2  ;;  %35 = vst.msk [vmem:[#allocation2 + $0x97] sm:$0x1] %vm28_vm1, %v6102_v2  ;;  %5370 = vmatprep.mubr.msk.f32.mxu0 %vm14_vm0, %v398_v7  ;;  %v6335_v17 = vld [vmem:[%s7772_s0 + $0x88] sm:$0xff]  ;;  %v6340_v18 = vld [vmem:[%s7772_s0 + $0x80] sm:$0xff] }
   0xa   :  { %36 = vst.msk [vmem:[#allocation2 + $0xaf] sm:$0x1] %vm28_vm1, %v6102_v2  ;;  %37 = vst.msk [vmem:[#allocation2 + $0xc7] sm:$0x1] %vm28_vm1, %v6102_v2  ;;  %198 = vrot.lane.b32.xlu1 %v6259_v5, %s6103_s16  ;;  %196 = vrot.lane.b32.xlu0 %v6264_v6, %s6103_s16  ;;  %v6349_v19 = vld [vmem:[%s7773_s1] sm:$0xf] }
   0xb   :  { %40 = vst.msk [vmem:[#allocation2 + $0x10f] sm:$0x1] %vm28_vm1, %v6102_v2  ;;  %41 = vst.msk [vmem:[#allocation2 + $0x127] sm:$0x1] %vm28_vm1, %v6102_v2  ;;  %v6354_v20 = vld [vmem:[%s7772_s0 + $0x98] sm:$0xff]  ;;  %v6359_v21 = vld [vmem:[%s7772_s0 + $0x90] sm:$0xff]  ;;  %5394 = vmatprep.subr.msk.mxu0 %vm463_vm2, %v6349_v19 }
   0xc   :  { %42 = vst.msk [vmem:[#allocation2 + $0x13f] sm:$0x1] %vm28_vm1, %v6102_v2  ;;  %43 = vst.msk [vmem:[#allocation2 + $0x157] sm:$0x1] %vm28_vm1, %v6102_v2  ;;  %v6370_v22 = vld [vmem:[%s7772_s0 + $0xa8] sm:$0xff]  ;;  %v6375_v23 = vld [vmem:[%s7772_s0 + $0xa0] sm:$0xff] }
   0xd   :  { %44 = vst.msk [vmem:[#allocation2 + $0x16f] sm:$0x1] %vm28_vm1, %v6102_v2  ;;  %45 = vst.msk [vmem:[#allocation2 + $0x187] sm:$0x1] %vm28_vm1, %v6102_v2  ;;  %v6384_v24 = vld [vmem:[%s7772_s0 + $0xb8] sm:$0xff]  ;;  %v6389_v25 = vld [vmem:[%s7772_s0 + $0xb0] sm:$0xff] }
   0xe   :  { %46 = vst.msk [vmem:[#allocation2 + $0x19f] sm:$0x1] %vm28_vm1, %v6102_v2  ;;  %47 = vst.msk [vmem:[#allocation2 + $0x1b7] sm:$0x1] %vm28_vm1, %v6102_v2  ;;  %202 = vrot.lane.b32.xlu1 %v6273_v8, %s6103_s16  ;;  %200 = vrot.lane.b32.xlu0 %v6278_v9, %s6103_s16  ;;  %v6398_v26 = vld [vmem:[%s7772_s0 + $0xc8] sm:$0xff]  ;;  %v6403_v27 = vld [vmem:[%s7772_s0 + $0xc0] sm:$0xff] }
   0xf   :  { %50 = vst.msk [vmem:[#allocation2 + $0x28] sm:$0x1] %vm28_vm1, %v6102_v2  ;;  %51 = vst.msk [vmem:[#allocation2 + $0x40] sm:$0x1] %vm28_vm1, %v6102_v2  ;;  %v6412_v28 = vld [vmem:[%s7772_s0 + $0xd8] sm:$0xff]  ;;  %v6417_v29 = vld [vmem:[%s7772_s0 + $0xd0] sm:$0xff] }
  0x10   :  { %52 = vst.msk [vmem:[#allocation2 + $0x58] sm:$0x1] %vm28_vm1, %v6102_v2  ;;  %53 = vst.msk [vmem:[#allocation2 + $0x70] sm:$0x1] %vm28_vm1, %v6102_v2  ;;  %v6426_v30 = vld [vmem:[%s7772_s0 + $0xe8] sm:$0xff]  ;;  %v6431_v31 = vld [vmem:[%s7772_s0 + $0xe0] sm:$0xff] }
  0x11   :  { %54 = vst.msk [vmem:[#allocation2 + $0x88] sm:$0x1] %vm28_vm1, %v6102_v2  ;;  %55 = vst.msk [vmem:[#allocation2 + $0xa0] sm:$0x1] %vm28_vm1, %v6102_v2  ;;  %v6440_v32 = vld [vmem:[%s7772_s0 + $0x78] sm:$0xff]  ;;  %v6445_v33 = vld [vmem:[%s7772_s0 + $0x70] sm:$0xff] }
  0x12   :  { %56 = vst.msk [vmem:[#allocation2 + $0xb8] sm:$0x1] %vm28_vm1, %v6102_v2  ;;  %57 = vst.msk [vmem:[#allocation2 + $0xd0] sm:$0x1] %vm28_vm1, %v6102_v2  ;;  %206 = vrot.lane.b32.xlu1 %v6293_v11, %s6103_s16  ;;  %204 = vrot.lane.b32.xlu0 %v6298_v12, %s6103_s16  ;;  %v6454_v34 = vld [vmem:[%s7772_s0 + $0xf8] sm:$0xff]  ;;  %v6459_v35 = vld [vmem:[%s7772_s0 + $0xf0] sm:$0xff] }
  0x13   :  { %60 = vst.msk [vmem:[#allocation2 + $0x118] sm:$0x1] %vm28_vm1, %v6102_v2  ;;  %61 = vst.msk [vmem:[#allocation2 + $0x130] sm:$0x1] %vm28_vm1, %v6102_v2  ;;  %v6493_v7 = vld [vmem:[%s7773_s1 + $0x8] sm:$0xf] }
  0x14   :  { %62 = vst.msk [vmem:[#allocation2 + $0x148] sm:$0x1] %vm28_vm1, %v6102_v2  ;;  %63 = vst.msk [vmem:[#allocation2 + $0x160] sm:$0x1] %vm28_vm1, %v6102_v2 }
  0x15   :  { %64 = vst.msk [vmem:[#allocation2 + $0x178] sm:$0x1] %vm28_vm1, %v6102_v2  ;;  %65 = vst.msk [vmem:[#allocation2 + $0x190] sm:$0x1] %vm28_vm1, %v6102_v2 }
  0x16   :  { %66 = vst.msk [vmem:[#allocation2 + $0x1a8] sm:$0x1] %vm28_vm1, %v6102_v2  ;;  %67 = vst.msk [vmem:[#allocation2 + $0x1c0] sm:$0x1] %vm28_vm1, %v6102_v2  ;;  %210 = vrot.lane.b32.xlu1 %v6307_v13, %s6103_s16  ;;  %208 = vrot.lane.b32.xlu0 %v6312_v14, %s6103_s16 }
  0x17   :  { %29 = vst.msk [vmem:[#allocation2 + $0x7] sm:$0x1] %vm28_vm1, %v6102_v2  ;;  %38 = vst.msk [vmem:[#allocation2 + $0xdf] sm:$0x1] %vm28_vm1, %v6102_v2 }
  0x18   :  { %39 = vst.msk [vmem:[#allocation2 + $0xf7] sm:$0x1] %vm28_vm1, %v6102_v2  ;;  %48 = vst.msk [vmem:[#allocation2 + $0x1cf] sm:$0x1] %vm28_vm1, %v6102_v2 }
  0x19   :  { %49 = vst.msk [vmem:[#allocation2 + $0x10] sm:$0x1] %vm28_vm1, %v6102_v2  ;;  %58 = vst.msk [vmem:[#allocation2 + $0xe8] sm:$0x1] %vm28_vm1, %v6102_v2 }
  0x1a   :  { %59 = vst.msk [vmem:[#allocation2 + $0x100] sm:$0x1] %vm28_vm1, %v6102_v2  ;;  %68 = vst.msk [vmem:[#allocation2 + $0x1d8] sm:$0x1] %vm28_vm1, %v6102_v2  ;;  %214 = vrot.lane.b32.xlu1 %v6321_v15, %s6103_s16  ;;  %212 = vrot.lane.b32.xlu0 %v6326_v16, %s6103_s16 }
  0x1b   :  { %70 = vst.msk [vmem:[#allocation3] sm:$0xff] %vm69_vm3, %v6102_v2  ;;  %71 = vst.msk [vmem:[#allocation3 + $0x8] sm:$0xff] %vm69_vm3, %v6102_v2 }
  0x1c   :  { %72 = vst.msk [vmem:[#allocation3 + $0x10] sm:$0xff] %vm69_vm3, %v6102_v2  ;;  %73 = vst.msk [vmem:[#allocation3 + $0xf0] sm:$0xff] %vm69_vm3, %v6102_v2 }
  0x1d   :  { %74 = vst.msk [vmem:[#allocation3 + $0xf8] sm:$0xff] %vm69_vm3, %v6102_v2  ;;  %75 = vst.msk [vmem:[#allocation3 + $0x100] sm:$0xff] %vm69_vm3, %v6102_v2 }
  0x1e   :  { %222 = vrot.lane.b32.xlu1 %v6335_v17, %s6103_s16  ;;  %220 = vrot.lane.b32.xlu0 %v6340_v18, %s6103_s16  ;;  %77 = vst.msk [vmem:[#allocation3 + $0xd8] sm:$0xff] %vm69_vm3, %v6102_v2  ;;  %78 = vst.msk [vmem:[#allocation3 + $0xe0] sm:$0xff] %vm69_vm3, %v6102_v2 }
  0x1f   :  { %79 = vst.msk [vmem:[#allocation3 + $0xe8] sm:$0xff] %vm69_vm3, %v6102_v2  ;;  %80 = vst.msk [vmem:[#allocation3 + $0x1c8] sm:$0xff] %vm69_vm3, %v6102_v2 }
  0x20   :  { %81 = vst.msk [vmem:[#allocation3 + $0x1d0] sm:$0xff] %vm69_vm3, %v6102_v2  ;;  %82 = vst.msk [vmem:[#allocation3 + $0x1d8] sm:$0xff] %vm69_vm3, %v6102_v2 }
  0x21   :  { %84 = vst.msk [vmem:[#allocation3 + $0x7] sm:$0x1] %vm83_vm4, %v6102_v2  ;;  %85 = vst.msk [vmem:[#allocation3 + $0x1f] sm:$0x1] %vm83_vm4, %v6102_v2 }
  0x22   :  { %226 = vrot.lane.b32.xlu1 %v6354_v20, %s6103_s16  ;;  %224 = vrot.lane.b32.xlu0 %v6359_v21, %s6103_s16  ;;  %86 = vst.msk [vmem:[#allocation3 + $0x37] sm:$0x1] %vm83_vm4, %v6102_v2  ;;  %87 = vst.msk [vmem:[#allocation3 + $0x4f] sm:$0x1] %vm83_vm4, %v6102_v2 }
  0x23   :  { %88 = vst.msk [vmem:[#allocation3 + $0x67] sm:$0x1] %vm83_vm4, %v6102_v2  ;;  %89 = vst.msk [vmem:[#allocation3 + $0x7f] sm:$0x1] %vm83_vm4, %v6102_v2 }
  0x24   :  { %90 = vst.msk [vmem:[#allocation3 + $0x97] sm:$0x1] %vm83_vm4, %v6102_v2  ;;  %91 = vst.msk [vmem:[#allocation3 + $0xaf] sm:$0x1] %vm83_vm4, %v6102_v2 }
  0x25   :  { %92 = vst.msk [vmem:[#allocation3 + $0xc7] sm:$0x1] %vm83_vm4, %v6102_v2  ;;  %93 = vst.msk [vmem:[#allocation3 + $0xdf] sm:$0x1] %vm83_vm4, %v6102_v2 }
  0x26   :  { %230 = vrot.lane.b32.xlu1 %v6370_v22, %s6103_s16  ;;  %228 = vrot.lane.b32.xlu0 %v6375_v23, %s6103_s16  ;;  %94 = vst.msk [vmem:[#allocation3 + $0xf7] sm:$0x1] %vm83_vm4, %v6102_v2  ;;  %95 = vst.msk [vmem:[#allocation3 + $0x10f] sm:$0x1] %vm83_vm4, %v6102_v2 }
  0x27   :  { %96 = vst.msk [vmem:[#allocation3 + $0x127] sm:$0x1] %vm83_vm4, %v6102_v2  ;;  %97 = vst.msk [vmem:[#allocation3 + $0x13f] sm:$0x1] %vm83_vm4, %v6102_v2 }
  0x28   :  { %98 = vst.msk [vmem:[#allocation3 + $0x157] sm:$0x1] %vm83_vm4, %v6102_v2  ;;  %99 = vst.msk [vmem:[#allocation3 + $0x16f] sm:$0x1] %vm83_vm4, %v6102_v2 }
  0x29   :  { %100 = vst.msk [vmem:[#allocation3 + $0x187] sm:$0x1] %vm83_vm4, %v6102_v2  ;;  %101 = vst.msk [vmem:[#allocation3 + $0x19f] sm:$0x1] %vm83_vm4, %v6102_v2 }
  0x2a   :  { %234 = vrot.lane.b32.xlu1 %v6384_v24, %s6103_s16  ;;  %232 = vrot.lane.b32.xlu0 %v6389_v25, %s6103_s16  ;;  %102 = vst.msk [vmem:[#allocation3 + $0x1b7] sm:$0x1] %vm83_vm4, %v6102_v2  ;;  %103 = vst.msk [vmem:[#allocation3 + $0x1cf] sm:$0x1] %vm83_vm4, %v6102_v2 }
  0x2b   :  { %104 = vst.msk [vmem:[#allocation3 + $0x10] sm:$0x1] %vm83_vm4, %v6102_v2  ;;  %105 = vst.msk [vmem:[#allocation3 + $0x28] sm:$0x1] %vm83_vm4, %v6102_v2 }
  0x2c   :  { %106 = vst.msk [vmem:[#allocation3 + $0x40] sm:$0x1] %vm83_vm4, %v6102_v2  ;;  %107 = vst.msk [vmem:[#allocation3 + $0x58] sm:$0x1] %vm83_vm4, %v6102_v2 }
  0x2d   :  { %108 = vst.msk [vmem:[#allocation3 + $0x70] sm:$0x1] %vm83_vm4, %v6102_v2  ;;  %109 = vst.msk [vmem:[#allocation3 + $0x88] sm:$0x1] %vm83_vm4, %v6102_v2 }
  0x2e   :  { %238 = vrot.lane.b32.xlu1 %v6398_v26, %s6103_s16  ;;  %236 = vrot.lane.b32.xlu0 %v6403_v27, %s6103_s16  ;;  %110 = vst.msk [vmem:[#allocation3 + $0xa0] sm:$0x1] %vm83_vm4, %v6102_v2  ;;  %111 = vst.msk [vmem:[#allocation3 + $0xb8] sm:$0x1] %vm83_vm4, %v6102_v2 }
  0x2f   :  { %112 = vst.msk [vmem:[#allocation3 + $0xd0] sm:$0x1] %vm83_vm4, %v6102_v2  ;;  %113 = vst.msk [vmem:[#allocation3 + $0xe8] sm:$0x1] %vm83_vm4, %v6102_v2 }
  0x30   :  { %114 = vst.msk [vmem:[#allocation3 + $0x100] sm:$0x1] %vm83_vm4, %v6102_v2  ;;  %115 = vst.msk [vmem:[#allocation3 + $0x118] sm:$0x1] %vm83_vm4, %v6102_v2 }
  0x31   :  { %116 = vst.msk [vmem:[#allocation3 + $0x130] sm:$0x1] %vm83_vm4, %v6102_v2  ;;  %117 = vst.msk [vmem:[#allocation3 + $0x148] sm:$0x1] %vm83_vm4, %v6102_v2 }
  0x32   :  { %242 = vrot.lane.b32.xlu1 %v6412_v28, %s6103_s16  ;;  %240 = vrot.lane.b32.xlu0 %v6417_v29, %s6103_s16  ;;  %118 = vst.msk [vmem:[#allocation3 + $0x160] sm:$0x1] %vm83_vm4, %v6102_v2  ;;  %119 = vst.msk [vmem:[#allocation3 + $0x178] sm:$0x1] %vm83_vm4, %v6102_v2 }
  0x33   :  { %120 = vst.msk [vmem:[#allocation3 + $0x190] sm:$0x1] %vm83_vm4, %v6102_v2  ;;  %121 = vst.msk [vmem:[#allocation3 + $0x1a8] sm:$0x1] %vm83_vm4, %v6102_v2 }
  0x34   :  { %122 = vst.msk [vmem:[#allocation3 + $0x1c0] sm:$0x1] %vm83_vm4, %v6102_v2  ;;  %123 = vst.msk [vmem:[#allocation3 + $0x1d8] sm:$0x1] %vm83_vm4, %v6102_v2 }
  0x36   :  { %246 = vrot.lane.b32.xlu1 %v6426_v30, %s6103_s16  ;;  %244 = vrot.lane.b32.xlu0 %v6431_v31, %s6103_s16 }
  0x3a   :  { %218 = vrot.lane.b32.xlu1 %v6440_v32, %s6103_s16  ;;  %216 = vrot.lane.b32.xlu0 %v6445_v33, %s6103_s16 }
  0x3e   :  { %250 = vrot.lane.b32.xlu1 %v6454_v34, %s6103_s16  ;;  %248 = vrot.lane.b32.xlu0 %v6459_v35, %s6103_s16 }
  0x74   :  { %v193_v36 = vpop.permute.xlu1 %192  ;;  %v189_v37 = vpop.permute.xlu0 %188 }
  0x75   :  { %v286_v38 = vmax.f32 %v6127_v0, %v193_v36  ;;  %v284_v39 = vmax.f32 %v6132_v1, %v189_v37 }
  0x77   :  { %v319_v44 = vsel %vm14_vm0, %v286_v38, -inf  ;;  %v316_v45 = vsel %vm14_vm0, %v284_v39, -inf }
  0x78   :  { %v195_v40 = vpop.permute.xlu1 %194  ;;  %v191_v41 = vpop.permute.xlu0 %190 }
  0x79   :  { %v287_v42 = vmax.f32 %v6245_v3, %v195_v40  ;;  %v285_v43 = vmax.f32 %v6250_v4, %v191_v41 }
  0x7b   :  { %v320_v46 = vsel %vm14_vm0, %v287_v42, -inf  ;;  %v317_v47 = vsel %vm14_vm0, %v285_v43, -inf }
  0x7c   :  { %v321_v48 = vmax.f32 %v319_v44, %v320_v46  ;;  %v318_v49 = vmax.f32 %v316_v45, %v317_v47  ;;  %v199_v50 = vpop.permute.xlu1 %198  ;;  %v197_v51 = vpop.permute.xlu0 %196 }
  0x7d   :  { %v289_v52 = vmax.f32 %v6259_v5, %v199_v50  ;;  %v288_v53 = vmax.f32 %v6264_v6, %v197_v51 }
  0x7e   :  { %366 = vst.msk [vmem:[#allocation2 + $0x38] sm:$0xff] %vm14_vm0, %v321_v48  ;;  %365 = vst.msk [vmem:[#allocation2 + $0x20] sm:$0xff] %vm14_vm0, %v318_v49 }
  0x7f   :  { %v323_v54 = vsel %vm14_vm0, %v289_v52, -inf  ;;  %v322_v55 = vsel %vm14_vm0, %v288_v53, -inf }
  0x80   :  { %v324_v56 = vmax.f32 %v322_v55, %v323_v54  ;;  %v203_v57 = vpop.permute.xlu1 %202  ;;  %v201_v58 = vpop.permute.xlu0 %200 }
  0x81   :  { %v291_v59 = vmax.f32 %v6273_v8, %v203_v57  ;;  %v290_v60 = vmax.f32 %v6278_v9, %v201_v58 }
  0x82   :  { %367 = vst.msk [vmem:[#allocation2 + $0x50] sm:$0xff] %vm14_vm0, %v324_v56 }
  0x83   :  { %v326_v61 = vsel %vm14_vm0, %v291_v59, -inf  ;;  %v325_v62 = vsel %vm14_vm0, %v290_v60, -inf }
  0x84   :  { %v327_v63 = vmax.f32 %v325_v62, %v326_v61  ;;  %v207_v0 = vpop.permute.xlu1 %206  ;;  %v205_v1 = vpop.permute.xlu0 %204  ;;  %v406_v61 = vld [vmem:[#allocation2 + $0xf8] sm:$0xff] }
  0x85   :  { %v293_v3 = vmax.f32 %v6293_v11, %v207_v0  ;;  %v292_v4 = vmax.f32 %v6298_v12, %v205_v1  ;;  %v6486_v5 = vld [vmem:[#allocation2 + $0x20] sm:$0xff]  ;;  %v6488_v6 = vld [vmem:[#allocation2 + $0x38] sm:$0xff] }
  0x86   :  { %368 = vst.msk [vmem:[#allocation2 + $0x68] sm:$0xff] %vm14_vm0, %v327_v63  ;;  %5371 = vmatmul.mubr.msk.f32.vlgmr.msra.gmra.mrb[0].mxu0 %vm14_vm0, %v6486_v5 }
  0x87   :  { %v329_v8 = vsel %vm14_vm0, %v293_v3, -inf  ;;  %v328_v9 = vsel %vm14_vm0, %v292_v4, -inf  ;;  %5373 = vmatprep.mubr.msk.f32.mxu0 %vm14_vm0, %v6488_v6  ;;  %5395 = vmatpush3.msk.msra.mxu0 %vm463_vm2, %v6349_v19 }
  0x88   :  { %v330_v10 = vmax.f32 %v328_v9, %v329_v8  ;;  %v211_v11 = vpop.permute.xlu1 %210  ;;  %v209_v12 = vpop.permute.xlu0 %208  ;;  %5420 = vmatprep.subr.msk.mxu0 %vm463_vm2, %v6493_v7 }
  0x89   :  { %v295_v36 = vmax.f32 %v6307_v13, %v211_v11  ;;  %v294_v37 = vmax.f32 %v6312_v14, %v209_v12  ;;  %v6508_v38 = vld [vmem:[#allocation2 + $0x50] sm:$0xff] }
  0x8a   :  { %369 = vst.msk [vmem:[#allocation2 + $0x80] sm:$0xff] %vm14_vm0, %v330_v10  ;;  %5374 = vmatmul.mubr.msk.f32.gmra.mrb[2].mxu0 %vm14_vm0, %v6508_v38 }
  0x8b   :  { %v332_v39 = vsel %vm14_vm0, %v295_v36, -inf  ;;  %v331_v19 = vsel %vm14_vm0, %v294_v37, -inf }
  0x8c   :  { %v333_v40 = vmax.f32 %v331_v19, %v332_v39  ;;  %v215_v41 = vpop.permute.xlu1 %214  ;;  %v213_v42 = vpop.permute.xlu0 %212 }
  0x8d   :  { %v297_v43 = vmax.f32 %v6321_v15, %v215_v41  ;;  %v296_v13 = vmax.f32 %v6326_v16, %v213_v42  ;;  %v6517_v44 = vld [vmem:[#allocation2 + $0x68] sm:$0xff] }
  0x8e   :  { %370 = vst.msk [vmem:[#allocation2 + $0x98] sm:$0xff] %vm14_vm0, %v333_v40  ;;  %5376 = vmatprep.mubr.msk.f32.mxu0 %vm14_vm0, %v6517_v44 }
  0x8f   :  { %v335_v14 = vsel %vm14_vm0, %v297_v43, -inf  ;;  %v334_v45 = vsel %vm14_vm0, %v296_v13, -inf }
  0x90   :  { %v336_v46 = vmax.f32 %v334_v45, %v335_v14  ;;  %v223_v47 = vpop.permute.xlu1 %222  ;;  %v221_v48 = vpop.permute.xlu0 %220 }
  0x91   :  { %v301_v49 = vmax.f32 %v6335_v17, %v223_v47  ;;  %v300_v15 = vmax.f32 %v6340_v18, %v221_v48  ;;  %v6526_v50 = vld [vmem:[#allocation2 + $0x80] sm:$0xff] }
  0x92   :  { %371 = vst.msk [vmem:[#allocation2 + $0xb0] sm:$0xff] %vm14_vm0, %v336_v46  ;;  %5377 = vmatmul.mubr.msk.f32.gmra.mrb[4].mxu0 %vm14_vm0, %v6526_v50 }
  0x93   :  { %v341_v16 = vsel %vm14_vm0, %v301_v49, -inf  ;;  %v340_v51 = vsel %vm14_vm0, %v300_v15, -inf }
  0x94   :  { %v342_v52 = vmax.f32 %v340_v51, %v341_v16  ;;  %v227_v53 = vpop.permute.xlu1 %226  ;;  %v225_v54 = vpop.permute.xlu0 %224 }
  0x95   :  { %v303_v55 = vmax.f32 %v6354_v20, %v227_v53  ;;  %v302_v17 = vmax.f32 %v6359_v21, %v225_v54  ;;  %v6535_v56 = vld [vmem:[#allocation2 + $0x98] sm:$0xff] }
  0x96   :  { %373 = vst.msk [vmem:[#allocation2 + $0x110] sm:$0xff] %vm14_vm0, %v342_v52  ;;  %5379 = vmatprep.mubr.msk.f32.mxu0 %vm14_vm0, %v6535_v56 }
  0x97   :  { %v344_v18 = vsel %vm14_vm0, %v303_v55, -inf  ;;  %v343_v57 = vsel %vm14_vm0, %v302_v17, -inf }
  0x98   :  { %v345_v58 = vmax.f32 %v343_v57, %v344_v18  ;;  %v231_v59 = vpop.permute.xlu1 %230  ;;  %v229_v60 = vpop.permute.xlu0 %228 }
  0x99   :  { %v305_v62 = vmax.f32 %v6370_v22, %v231_v59  ;;  %v304_v20 = vmax.f32 %v6375_v23, %v229_v60  ;;  %v6544_v21 = vld [vmem:[#allocation2 + $0xb0] sm:$0xff] }
  0x9a   :  { %374 = vst.msk [vmem:[#allocation2 + $0x128] sm:$0xff] %vm14_vm0, %v345_v58  ;;  %5380 = vmatmul.mubr.msk.f32.gmra.mrb[6].mxu0 %vm14_vm0, %v6544_v21 }
  0x9b   :  { %v347_v63 = vsel %vm14_vm0, %v305_v62, -inf  ;;  %v346_v0 = vsel %vm14_vm0, %v304_v20, -inf  ;;  %5382 = vmatprep.mubr.msk.f32.mxu0 %vm14_vm0, %v406_v61  ;;  %v381_v61 = vld [vmem:[#allocation2 + $0x7] sm:$0xff] }
  0x9c   :  { %v348_v1 = vmax.f32 %v346_v0, %v347_v63  ;;  %v235_v3 = vpop.permute.xlu1 %234  ;;  %v233_v4 = vpop.permute.xlu0 %232  ;;  %v6619_v63 = vld [vmem:[#allocation2 + $0x37] sm:$0xff]  ;;  %v6626_v0 = vld [vmem:[#allocation2 + $0x4f] sm:$0xff] }
  0x9d   :  { %v307_v22 = vmax.f32 %v6384_v24, %v235_v3  ;;  %v306_v23 = vmax.f32 %v6389_v25, %v233_v4  ;;  %v6554_v8 = vld [vmem:[#allocation2 + $0x110] sm:$0xff]  ;;  %v6634_v3 = vld [vmem:[#allocation2 + $0x7f] sm:$0xff] }
  0x9e   :  { %375 = vst.msk [vmem:[#allocation2 + $0x140] sm:$0xff] %vm14_vm0, %v348_v1  ;;  %5383 = vmatmul.mubr.msk.f32.gmra.mrb[8].mxu0 %vm14_vm0, %v6554_v8  ;;  %v6630_v1 = vld [vmem:[#allocation2 + $0x67] sm:$0xff]  ;;  %v389_v4 = vld [vmem:[#allocation2 + $0xf7] sm:$0xff] }
  0x9f   :  { %v350_v9 = vsel %vm14_vm0, %v307_v22, -inf  ;;  %v349_v10 = vsel %vm14_vm0, %v306_v23, -inf  ;;  %v6642_v22 = vld [vmem:[#allocation2 + $0xaf] sm:$0xff] }
  0xa0   :  { %v351_v11 = vmax.f32 %v349_v10, %v350_v9  ;;  %v239_v12 = vpop.permute.xlu1 %238  ;;  %v237_v36 = vpop.permute.xlu0 %236  ;;  %v390_v23 = vld [vmem:[#allocation2 + $0x10f] sm:$0xff] }
  0xa1   :  { %v309_v37 = vmax.f32 %v6398_v26, %v239_v12  ;;  %v308_v24 = vmax.f32 %v6403_v27, %v237_v36  ;;  %v6563_v39 = vld [vmem:[#allocation2 + $0x128] sm:$0xff] }
  0xa2   :  { %376 = vst.msk [vmem:[#allocation2 + $0x158] sm:$0xff] %vm14_vm0, %v351_v11  ;;  %5385 = vmatprep.mubr.msk.f32.mxu0 %vm14_vm0, %v6563_v39  ;;  %v6648_v9 = vld [vmem:[#allocation2 + $0x127] sm:$0xff] }
  0xa3   :  { %v353_v25 = vsel %vm14_vm0, %v309_v37, -inf  ;;  %v352_v19 = vsel %vm14_vm0, %v308_v24, -inf  ;;  %v808_v37 = vld [vmem:[#allocation2 + $0x9] sm:$0xff] }
  0xa4   :  { %v354_v40 = vmax.f32 %v352_v19, %v353_v25  ;;  %v243_v41 = vpop.permute.xlu1 %242  ;;  %v241_v42 = vpop.permute.xlu0 %240  ;;  %v6673_v25 = vld [vmem:[#allocation2 + $0x21] sm:$0xff]  ;;  %v1282_v19 = vld [vmem:[%s7773_s1 + $0x10] sm:$0xf] }
  0xa5   :  { %v311_v43 = vmax.f32 %v6412_v28, %v243_v41  ;;  %v310_v26 = vmax.f32 %v6417_v29, %v241_v42  ;;  %v6572_v13 = vld [vmem:[#allocation2 + $0x140] sm:$0xff]  ;;  %v6686_v41 = vld [vmem:[#allocation2 + $0x51] sm:$0xff]  ;;  %v6690_v42 = vld [vmem:[#allocation2 + $0x69] sm:$0xff] }
  0xa6   :  { %377 = vst.msk [vmem:[#allocation2 + $0x170] sm:$0xff] %vm14_vm0, %v354_v40  ;;  %5386 = vmatmul.mubr.msk.f32.gmra.mrb[10].mxu0 %vm14_vm0, %v6572_v13  ;;  %v6652_v10 = vld [vmem:[#allocation2 + $0x13f] sm:$0xff] }
  0xa7   :  { %v356_v27 = vsel %vm14_vm0, %v311_v43, -inf  ;;  %v355_v14 = vsel %vm14_vm0, %v310_v26, -inf  ;;  %v6680_v40 = vld [vmem:[#allocation2 + $0x39] sm:$0xff]  ;;  %v6694_v43 = vld [vmem:[#allocation2 + $0x81] sm:$0xff] }
  0xa8   :  { %v357_v45 = vmax.f32 %v355_v14, %v356_v27  ;;  %v247_v46 = vpop.permute.xlu1 %246  ;;  %v245_v47 = vpop.permute.xlu0 %244  ;;  %v6698_v26 = vld [vmem:[#allocation2 + $0x99] sm:$0xff]  ;;  %v6702_v14 = vld [vmem:[#allocation2 + $0xb1] sm:$0xff] }
  0xa9   :  { %v313_v48 = vmax.f32 %v6426_v30, %v247_v46  ;;  %v312_v28 = vmax.f32 %v6431_v31, %v245_v47  ;;  %v6581_v49 = vld [vmem:[#allocation2 + $0x158] sm:$0xff]  ;;  %v6711_v46 = vld [vmem:[#allocation2 + $0x129] sm:$0xff]  ;;  %v6715_v47 = vld [vmem:[#allocation2 + $0x141] sm:$0xff] }
  0xaa   :  { %378 = vst.msk [vmem:[#allocation2 + $0x188] sm:$0xff] %vm14_vm0, %v357_v45  ;;  %5388 = vmatprep.mubr.msk.f32.mxu0 %vm14_vm0, %v6581_v49  ;;  %v6656_v11 = vld [vmem:[#allocation2 + $0x157] sm:$0xff] }
  0xab   :  { %v359_v29 = vsel %vm14_vm0, %v313_v48, -inf  ;;  %v358_v15 = vsel %vm14_vm0, %v312_v28, -inf  ;;  %v816_v27 = vld [vmem:[#allocation2 + $0xf9] sm:$0xff]  ;;  %v6707_v45 = vld [vmem:[#allocation2 + $0x111] sm:$0xff] }
  0xac   :  { %v360_v16 = vmax.f32 %v358_v15, %v359_v29  ;;  %v219_v51 = vpop.permute.xlu1 %218  ;;  %v217_v52 = vpop.permute.xlu0 %216  ;;  %v6719_v48 = vld [vmem:[#allocation2 + $0x159] sm:$0xff] }
  0xad   :  { %v6588_v53 = vld [vmem:[#allocation2 + $0x170] sm:$0xff]  ;;  %v299_v30 = vmax.f32 %v6440_v32, %v219_v51  ;;  %v298_v31 = vmax.f32 %v6445_v33, %v217_v52 }
  0xae   :  { %379 = vst.msk [vmem:[#allocation2 + $0x1a0] sm:$0xff] %vm14_vm0, %v360_v16  ;;  %5389 = vmatmul.mubr.msk.f32.gmra.mrb[12].mxu0 %vm14_vm0, %v6588_v53  ;;  %v6660_v12 = vld [vmem:[#allocation2 + $0x16f] sm:$0xff] }
  0xaf   :  { %v338_v54 = vsel %vm14_vm0, %v299_v30, -inf  ;;  %v337_v55 = vsel %vm14_vm0, %v298_v31, -inf  ;;  %v6723_v28 = vld [vmem:[#allocation2 + $0x171] sm:$0xff] }
  0xb0   :  { %v339_v17 = vmax.f32 %v337_v55, %v338_v54  ;;  %v251_v18 = vpop.permute.xlu1 %250  ;;  %v249_v57 = vpop.permute.xlu0 %248  ;;  %v1511_v16 = vld [vmem:[%s7773_s1 + $0x14] sm:$0xf]  ;;  %v1741_v30 = vld [vmem:[%s7773_s1 + $0x18] sm:$0xf] }
  0xb1   :  { %v6597_v58 = vld [vmem:[#allocation2 + $0x188] sm:$0xff]  ;;  %v315_v59 = vmax.f32 %v6454_v34, %v251_v18  ;;  %v314_v32 = vmax.f32 %v6459_v35, %v249_v57  ;;  %v6612_v34 = vld [vmem:[#allocation2 + $0x1f] sm:$0xff] }
  0xb2   :  { %5391 = vmatprep.mubr.msk.f32.mxu0 %vm14_vm0, %v6597_v58  ;;  %372 = vst.msk [vmem:[#allocation2 + $0xc8] sm:$0xff] %vm14_vm0, %v339_v17  ;;  %v1053_v35 = vld [vmem:[%s7773_s1 + $0xc] sm:$0xf]  ;;  %v2199_v17 = vld [vmem:[%s7773_s1 + $0x20] sm:$0xf] }
  0xb3   :  { %v362_v33 = vsel %vm14_vm0, %v315_v59, -inf  ;;  %v361_v60 = vsel %vm14_vm0, %v314_v32, -inf  ;;  %v6664_v36 = vld [vmem:[#allocation2 + $0x187] sm:$0xff]  ;;  %v1732_v18 = vld [vmem:[#allocation2 + $0xdf] sm:$0xff]  ;;  %v1740_v57 = vld [vmem:[#allocation2 + $0x1cf] sm:$0xff] }
  0xb4   :  { %v363_v62 = vmax.f32 %v361_v60, %v362_v33  ;;  %v6727_v29 = vld [vmem:[#allocation2 + $0x189] sm:$0xff] }
  0xb5   :  { %v6606_v20 = vld [vmem:[#allocation2 + $0x1a0] sm:$0xff] }
  0xb6   :  { %5392 = vmatmul.mubr.msk.f32.gmra.mrb[14].mxu0 %vm14_vm0, %v6606_v20  ;;  %380 = vst.msk [vmem:[#allocation2 + $0x1b8] sm:$0xff] %vm14_vm0, %v363_v62  ;;  %v6668_v24 = vld [vmem:[#allocation2 + $0x19f] sm:$0xff] }
  0xb7   :  { %5396 = vmatprep.mubr.msk.f32.mxu0 %vm14_vm0, %v381_v61  ;;  %v6731_v15 = vld [vmem:[#allocation2 + $0x1a1] sm:$0xff] }
  0xb9   :  { %v6754_v51 = vld [vmem:[#allocation2 + $0xc7] sm:$0xff] }
  0xba   :  { %5397 = vmatmul.mubr.msk.f32.vlgmr.msra.gmra.mrb[0].mxu0 %vm14_vm0, %v6612_v34  ;;  %v1502_v54 = vld [vmem:[#allocation2 + $0xc9] sm:$0xff] }
  0xbb   :  { %5421 = vmatpush3.msk.msra.mxu0 %vm463_vm2, %v6493_v7  ;;  %5399 = vmatprep.mubr.msk.f32.mxu0 %vm14_vm0, %v6619_v63  ;;  %v6638_v7 = vld [vmem:[#allocation2 + $0x97] sm:$0xff] }
  0xbc   :  { %5446 = vmatprep.subr.msk.mxu0 %vm463_vm2, %v1053_v35 }
  0xbd   :  { %v6771_v52 = vld [vmem:[#allocation2 + $0x1b7] sm:$0xff] }
  0xbe   :  { %5400 = vmatmul.mubr.msk.f32.gmra.mrb[2].mxu0 %vm14_vm0, %v6626_v0  ;;  %v6812_v31 = vld [vmem:[#allocation2 + $0x1b8] sm:$0xff] }
  0xbf   :  { %5402 = vmatprep.mubr.msk.f32.mxu0 %vm14_vm0, %v6630_v1  ;;  %v1510_v55 = vld [vmem:[#allocation2 + $0x1b9] sm:$0xff] }
  0xc2   :  { %5403 = vmatmul.mubr.msk.f32.gmra.mrb[4].mxu0 %vm14_vm0, %v6634_v3 }
  0xc3   :  { %5405 = vmatprep.mubr.msk.f32.mxu0 %vm14_vm0, %v6638_v7 }
  0xc6   :  { %5406 = vmatmul.mubr.msk.f32.gmra.mrb[6].mxu0 %vm14_vm0, %v6642_v22 }
  0xc7   :  { %5408 = vmatprep.mubr.msk.f32.mxu0 %vm14_vm0, %v389_v4 }
  0xca   :  { %5409 = vmatmul.mubr.msk.f32.gmra.mrb[8].mxu0 %vm14_vm0, %v390_v23 }
  0xcb   :  { %5411 = vmatprep.mubr.msk.f32.mxu0 %vm14_vm0, %v6648_v9 }
  0xce   :  { %5412 = vmatmul.mubr.msk.f32.gmra.mrb[10].mxu0 %vm14_vm0, %v6652_v10 }
  0xcf   :  { %5414 = vmatprep.mubr.msk.f32.mxu0 %vm14_vm0, %v6656_v11 }
  0xd2   :  { %5415 = vmatmul.mubr.msk.f32.gmra.mrb[12].mxu0 %vm14_vm0, %v6660_v12 }
  0xd3   :  { %5417 = vmatprep.mubr.msk.f32.mxu0 %vm14_vm0, %v6664_v36 }
  0xd6   :  { %5418 = vmatmul.mubr.msk.f32.gmra.mrb[14].mxu0 %vm14_vm0, %v6668_v24 }
  0xd7   :  { %5422 = vmatprep.mubr.msk.f32.mxu0 %vm14_vm0, %v808_v37 }
  0xda   :  { %5423 = vmatmul.mubr.msk.f32.vlgmr.msra.gmra.mrb[0].mxu0 %vm14_vm0, %v6673_v25 }
  0xdb   :  { %5447 = vmatpush3.msk.msra.mxu0 %vm463_vm2, %v1053_v35  ;;  %5425 = vmatprep.mubr.msk.f32.mxu0 %vm14_vm0, %v6680_v40 }
  0xdc   :  { %5472 = vmatprep.subr.msk.mxu0 %vm463_vm2, %v1282_v19 }
  0xde   :  { %5426 = vmatmul.mubr.msk.f32.gmra.mrb[2].mxu0 %vm14_vm0, %v6686_v41 }
  0xdf   :  { %5428 = vmatprep.mubr.msk.f32.mxu0 %vm14_vm0, %v6690_v42 }
  0xe2   :  { %5429 = vmatmul.mubr.msk.f32.gmra.mrb[4].mxu0 %vm14_vm0, %v6694_v43 }
  0xe3   :  { %5431 = vmatprep.mubr.msk.f32.mxu0 %vm14_vm0, %v6698_v26 }
  0xe6   :  { %5432 = vmatmul.mubr.msk.f32.gmra.mrb[6].mxu0 %vm14_vm0, %v6702_v14 }
  0xe7   :  { %5434 = vmatprep.mubr.msk.f32.mxu0 %vm14_vm0, %v816_v27 }
  0xea   :  { %5435 = vmatmul.mubr.msk.f32.gmra.mrb[8].mxu0 %vm14_vm0, %v6707_v45 }
  0xeb   :  { %5437 = vmatprep.mubr.msk.f32.mxu0 %vm14_vm0, %v6711_v46 }
  0xee   :  { %5438 = vmatmul.mubr.msk.f32.gmra.mrb[10].mxu0 %vm14_vm0, %v6715_v47 }
  0xef   :  { %5440 = vmatprep.mubr.msk.f32.mxu0 %vm14_vm0, %v6719_v48 }
  0xf2   :  { %5441 = vmatmul.mubr.msk.f32.gmra.mrb[12].mxu0 %vm14_vm0, %v6723_v28 }
  0xf3   :  { %5443 = vmatprep.mubr.msk.f32.mxu0 %vm14_vm0, %v6727_v29 }
  0xf6   :  { %5444 = vmatmul.mubr.msk.f32.gmra.mrb[14].mxu0 %vm14_vm0, %v6731_v15 }
  0xf7   :  { %5448 = vmatprep.mubr.msk.f32.mxu0 %vm14_vm0, %v6612_v34 }
  0xfa   :  { %5449 = vmatmul.mubr.msk.f32.vlgmr.msra.gmra.mrb[0].mxu0 %vm14_vm0, %v6619_v63 }
  0xfb   :  { %5473 = vmatpush3.msk.msra.mxu0 %vm463_vm2, %v1282_v19  ;;  %5451 = vmatprep.mubr.msk.f32.mxu0 %vm14_vm0, %v6626_v0 }
  0xfc   :  { %5498 = vmatprep.subr.msk.mxu0 %vm463_vm2, %v1511_v16 }
  0xfe   :  { %5452 = vmatmul.mubr.msk.f32.gmra.mrb[2].mxu0 %vm14_vm0, %v6630_v1 }
  0xff   :  { %5454 = vmatprep.mubr.msk.f32.mxu0 %vm14_vm0, %v6634_v3 }
 0x102   :  { %5455 = vmatmul.mubr.msk.f32.gmra.mrb[4].mxu0 %vm14_vm0, %v6638_v7 }
 0x103   :  { %5457 = vmatprep.mubr.msk.f32.mxu0 %vm14_vm0, %v6642_v22 }
 0x106   :  { %5458 = vmatmul.mubr.msk.f32.gmra.mrb[6].mxu0 %vm14_vm0, %v6754_v51 }
 0x107   :  { %5460 = vmatprep.mubr.msk.f32.mxu0 %vm14_vm0, %v390_v23 }
 0x10a   :  { %5461 = vmatmul.mubr.msk.f32.gmra.mrb[8].mxu0 %vm14_vm0, %v6648_v9 }
 0x10b   :  { %5463 = vmatprep.mubr.msk.f32.mxu0 %vm14_vm0, %v6652_v10 }
 0x10e   :  { %5464 = vmatmul.mubr.msk.f32.gmra.mrb[10].mxu0 %vm14_vm0, %v6656_v11 }
 0x10f   :  { %5466 = vmatprep.mubr.msk.f32.mxu0 %vm14_vm0, %v6660_v12 }
 0x112   :  { %5467 = vmatmul.mubr.msk.f32.gmra.mrb[12].mxu0 %vm14_vm0, %v6664_v36 }
 0x113   :  { %5469 = vmatprep.mubr.msk.f32.mxu0 %vm14_vm0, %v6668_v24 }
 0x116   :  { %5470 = vmatmul.mubr.msk.f32.gmra.mrb[14].mxu0 %vm14_vm0, %v6771_v52 }
 0x117   :  { %5474 = vmatprep.mubr.msk.f32.mxu0 %vm14_vm0, %v6486_v5  ;;  %v6794_v5 = vld [vmem:[#allocation2 + $0xc8] sm:$0xff] }
 0x11a   :  { %5475 = vmatmul.mubr.msk.f32.vlgmr.msra.gmra.mrb[0].mxu0 %vm14_vm0, %v6488_v6 }
 0x11b   :  { %5499 = vmatpush3.msk.msra.mxu0 %vm463_vm2, %v1511_v16  ;;  %5477 = vmatprep.mubr.msk.f32.mxu0 %vm14_vm0, %v6508_v38 }
 0x11c   :  { %5524 = vmatprep.subr.msk.mxu0 %vm463_vm2, %v1741_v30 }
 0x11e   :  { %5478 = vmatmul.mubr.msk.f32.gmra.mrb[2].mxu0 %vm14_vm0, %v6517_v44 }
 0x11f   :  { %5480 = vmatprep.mubr.msk.f32.mxu0 %vm14_vm0, %v6526_v50 }
 0x122   :  { %5481 = vmatmul.mubr.msk.f32.gmra.mrb[4].mxu0 %vm14_vm0, %v6535_v56 }
 0x123   :  { %5483 = vmatprep.mubr.msk.f32.mxu0 %vm14_vm0, %v6544_v21 }
 0x126   :  { %5484 = vmatmul.mubr.msk.f32.gmra.mrb[6].mxu0 %vm14_vm0, %v6794_v5 }
 0x127   :  { %5486 = vmatprep.mubr.msk.f32.mxu0 %vm14_vm0, %v6554_v8  ;;  %v1970_v8 = vld [vmem:[%s7773_s1 + $0x1c] sm:$0xf] }
 0x12a   :  { %5487 = vmatmul.mubr.msk.f32.gmra.mrb[8].mxu0 %vm14_vm0, %v6563_v39 }
 0x12b   :  { %5489 = vmatprep.mubr.msk.f32.mxu0 %vm14_vm0, %v6572_v13 }
 0x12e   :  { %5490 = vmatmul.mubr.msk.f32.gmra.mrb[10].mxu0 %vm14_vm0, %v6581_v49 }
 0x12f   :  { %5492 = vmatprep.mubr.msk.f32.mxu0 %vm14_vm0, %v6588_v53 }
 0x132   :  { %5493 = vmatmul.mubr.msk.f32.gmra.mrb[12].mxu0 %vm14_vm0, %v6597_v58 }
 0x133   :  { %5495 = vmatprep.mubr.msk.f32.mxu0 %vm14_vm0, %v6606_v20 }
 0x136   :  { %5496 = vmatmul.mubr.msk.f32.gmra.mrb[14].mxu0 %vm14_vm0, %v6812_v31 }
 0x137   :  { %5500 = vmatprep.mubr.msk.f32.mxu0 %vm14_vm0, %v6673_v25 }
 0x13a   :  { %5501 = vmatmul.mubr.msk.f32.vlgmr.msra.gmra.mrb[0].mxu0 %vm14_vm0, %v6680_v40 }
 0x13b   :  { %5525 = vmatpush3.msk.msra.mxu0 %vm463_vm2, %v1741_v30  ;;  %5503 = vmatprep.mubr.msk.f32.mxu0 %vm14_vm0, %v6686_v41 }
 0x13c   :  { %5550 = vmatprep.subr.msk.mxu0 %vm463_vm2, %v1970_v8 }
 0x13e   :  { %5504 = vmatmul.mubr.msk.f32.gmra.mrb[2].mxu0 %vm14_vm0, %v6690_v42 }
 0x13f   :  { %5506 = vmatprep.mubr.msk.f32.mxu0 %vm14_vm0, %v6694_v43 }
 0x142   :  { %5507 = vmatmul.mubr.msk.f32.gmra.mrb[4].mxu0 %vm14_vm0, %v6698_v26 }
 0x143   :  { %5509 = vmatprep.mubr.msk.f32.mxu0 %vm14_vm0, %v6702_v14 }
 0x146   :  { %5510 = vmatmul.mubr.msk.f32.gmra.mrb[6].mxu0 %vm14_vm0, %v1502_v54 }
 0x147   :  { %5512 = vmatprep.mubr.msk.f32.mxu0 %vm14_vm0, %v6707_v45 }
 0x14a   :  { %5513 = vmatmul.mubr.msk.f32.gmra.mrb[8].mxu0 %vm14_vm0, %v6711_v46 }
 0x14b   :  { %5515 = vmatprep.mubr.msk.f32.mxu0 %vm14_vm0, %v6715_v47 }
 0x14e   :  { %5516 = vmatmul.mubr.msk.f32.gmra.mrb[10].mxu0 %vm14_vm0, %v6719_v48 }
 0x14f   :  { %5518 = vmatprep.mubr.msk.f32.mxu0 %vm14_vm0, %v6723_v28 }
 0x152   :  { %5519 = vmatmul.mubr.msk.f32.gmra.mrb[12].mxu0 %vm14_vm0, %v6727_v29 }
 0x153   :  { %5521 = vmatprep.mubr.msk.f32.mxu0 %vm14_vm0, %v6731_v15 }
 0x156   :  { %5522 = vmatmul.mubr.msk.f32.gmra.mrb[14].mxu0 %vm14_vm0, %v1510_v55 }
 0x157   :  { %5526 = vmatprep.mubr.msk.f32.mxu0 %vm14_vm0, %v6619_v63 }
 0x15a   :  { %5527 = vmatmul.mubr.msk.f32.vlgmr.msra.gmra.mrb[0].mxu0 %vm14_vm0, %v6626_v0 }
 0x15b   :  { %5551 = vmatpush3.msk.msra.mxu0 %vm463_vm2, %v1970_v8  ;;  %5529 = vmatprep.mubr.msk.f32.mxu0 %vm14_vm0, %v6630_v1 }
 0x15c   :  { %5576 = vmatprep.subr.msk.mxu0 %vm463_vm2, %v2199_v17 }
 0x15e   :  { %5530 = vmatmul.mubr.msk.f32.gmra.mrb[2].mxu0 %vm14_vm0, %v6634_v3 }
 0x15f   :  { %5532 = vmatprep.mubr.msk.f32.mxu0 %vm14_vm0, %v6638_v7 }
 0x162   :  { %5533 = vmatmul.mubr.msk.f32.gmra.mrb[4].mxu0 %vm14_vm0, %v6642_v22 }
 0x163   :  { %5535 = vmatprep.mubr.msk.f32.mxu0 %vm14_vm0, %v6754_v51 }
 0x166   :  { %5536 = vmatmul.mubr.msk.f32.gmra.mrb[6].mxu0 %vm14_vm0, %v1732_v18 }
 0x167   :  { %5538 = vmatprep.mubr.msk.f32.mxu0 %vm14_vm0, %v6648_v9 }
 0x16a   :  { %5539 = vmatmul.mubr.msk.f32.gmra.mrb[8].mxu0 %vm14_vm0, %v6652_v10 }
 0x16b   :  { %5541 = vmatprep.mubr.msk.f32.mxu0 %vm14_vm0, %v6656_v11 }
 0x16e   :  { %5542 = vmatmul.mubr.msk.f32.gmra.mrb[10].mxu0 %vm14_vm0, %v6660_v12 }
 0x16f   :  { %5544 = vmatprep.mubr.msk.f32.mxu0 %vm14_vm0, %v6664_v36 }
 0x172   :  { %5545 = vmatmul.mubr.msk.f32.gmra.mrb[12].mxu0 %vm14_vm0, %v6668_v24 }
 0x173   :  { %5547 = vmatprep.mubr.msk.f32.mxu0 %vm14_vm0, %v6771_v52 }
 0x176   :  { %5548 = vmatmul.mubr.msk.f32.gmra.mrb[14].mxu0 %vm14_vm0, %v1740_v57 }
 0x177   :  { %5552 = vmatprep.mubr.msk.f32.mxu0 %vm14_vm0, %v6488_v6  ;;  %v1961_v6 = vld [vmem:[#allocation2 + $0xe0] sm:$0xff] }
 0x17a   :  { %5553 = vmatmul.mubr.msk.f32.vlgmr.msra.gmra.mrb[0].mxu0 %vm14_vm0, %v6508_v38  ;;  %v1969_v38 = vld [vmem:[#allocation2 + $0x1d0] sm:$0xff] }
 0x17b   :  { %5577 = vmatpush3.msk.msra.mxu0 %vm463_vm2, %v2199_v17  ;;  %5555 = vmatprep.mubr.msk.f32.mxu0 %vm14_vm0, %v6517_v44  ;;  %v2190_v44 = vld [vmem:[#allocation2 + $0xe1] sm:$0xff] }
 0x17e   :  { %5556 = vmatmul.mubr.msk.f32.gmra.mrb[2].mxu0 %vm14_vm0, %v6526_v50  ;;  %v2198_v50 = vld [vmem:[#allocation2 + $0x1d1] sm:$0xff] }
 0x17f   :  { %5558 = vmatprep.mubr.msk.f32.mxu0 %vm14_vm0, %v6535_v56  ;;  %v2619_v56 = vld [vmem:[%s7774_s2 + $0x8] sm:$0xff] }
 0x180   :  { %5602 = vmatprep.subr.mxu1 %v2619_v56 }
 0x181   :  { %5603 = vmatpush3.msra.mxu1 %v2619_v56 }
 0x182   :  { %5559 = vmatmul.mubr.msk.f32.gmra.mrb[4].mxu0 %vm14_vm0, %v6544_v21  ;;  %v2603_v21 = vld [vmem:[#allocation3 + $0x8] sm:$0xff] }
 0x183   :  { %5561 = vmatprep.mubr.msk.f32.mxu0 %vm14_vm0, %v6794_v5  ;;  %5604 = vmatprep.mubr.msk.f32.mxu1 %vm69_vm3, %v2603_v21 }
 0x186   :  { %5562 = vmatmul.mubr.msk.f32.gmra.mrb[6].mxu0 %vm14_vm0, %v1961_v6 }
 0x187   :  { %5564 = vmatprep.mubr.msk.f32.mxu0 %vm14_vm0, %v6563_v39  ;;  %v7056_v39 = vld [vmem:[%s7774_s2] sm:$0xff] }
 0x188   :  { %5628 = vmatprep.subr.mxu1 %v7056_v39 }
 0x18a   :  { %5565 = vmatmul.mubr.msk.f32.gmra.mrb[8].mxu0 %vm14_vm0, %v6572_v13 }
 0x18b   :  { %5567 = vmatprep.mubr.msk.f32.mxu0 %vm14_vm0, %v6581_v49 }
 0x18e   :  { %5568 = vmatmul.mubr.msk.f32.gmra.mrb[10].mxu0 %vm14_vm0, %v6588_v53 }
 0x18f   :  { %5570 = vmatprep.mubr.msk.f32.mxu0 %vm14_vm0, %v6597_v58 }
 0x192   :  { %5571 = vmatmul.mubr.msk.f32.gmra.mrb[12].mxu0 %vm14_vm0, %v6606_v20 }
 0x193   :  { %5573 = vmatprep.mubr.msk.f32.mxu0 %vm14_vm0, %v6812_v31 }
 0x196   :  { %5574 = vmatmul.mubr.msk.f32.gmra.mrb[14].mxu0 %vm14_vm0, %v1969_v38 }
 0x197   :  { %5578 = vmatprep.mubr.msk.f32.mxu0 %vm14_vm0, %v6680_v40 }
 0x19a   :  { %5579 = vmatmul.mubr.msk.f32.vlgmr.msra.gmra.mrb[0].mxu0 %vm14_vm0, %v6686_v41 }
 0x19b   :  { %5581 = vmatprep.mubr.msk.f32.mxu0 %vm14_vm0, %v6690_v42 }
 0x19e   :  { %5582 = vmatmul.mubr.msk.f32.gmra.mrb[2].mxu0 %vm14_vm0, %v6694_v43 }
 0x19f   :  { %5584 = vmatprep.mubr.msk.f32.mxu0 %vm14_vm0, %v6698_v26 }
 0x1a2   :  { %5585 = vmatmul.mubr.msk.f32.gmra.mrb[4].mxu0 %vm14_vm0, %v6702_v14 }
 0x1a3   :  { %5587 = vmatprep.mubr.msk.f32.mxu0 %vm14_vm0, %v1502_v54 }
 0x1a6   :  { %5588 = vmatmul.mubr.msk.f32.gmra.mrb[6].mxu0 %vm14_vm0, %v2190_v44 }
 0x1a7   :  { %5590 = vmatprep.mubr.msk.f32.mxu0 %vm14_vm0, %v6711_v46 }
 0x1aa   :  { %5591 = vmatmul.mubr.msk.f32.gmra.mrb[8].mxu0 %vm14_vm0, %v6715_v47 }
 0x1ab   :  { %5593 = vmatprep.mubr.msk.f32.mxu0 %vm14_vm0, %v6719_v48 }
 0x1ae   :  { %5594 = vmatmul.mubr.msk.f32.gmra.mrb[10].mxu0 %vm14_vm0, %v6723_v28 }
 0x1af   :  { %5596 = vmatprep.mubr.msk.f32.mxu0 %vm14_vm0, %v6727_v29 }
 0x1b2   :  { %5597 = vmatmul.mubr.msk.f32.gmra.mrb[12].mxu0 %vm14_vm0, %v6731_v15 }
 0x1b3   :  { %5599 = vmatprep.mubr.msk.f32.mxu0 %vm14_vm0, %v1510_v55 }
 0x1b6   :  { %5600 = vmatmul.mubr.msk.f32.gmra.mrb[14].mxu0 %vm14_vm0, %v2198_v50 }
 0x26d   :  { %v5580_v13 = vpop.f32.mrb[0].mxu0 }
 0x26e   :  { %v2413_v49 = vsel %vm69_vm3, %v5580_v13, 0.0  ;;  %v2317_v2 = vpop.f32.mrb[1].mxu0 }
 0x26f   :  { %v2412_v53 = vsel %vm69_vm3, %v2317_v2, 0.0 }
 0x270   :  { %v2414_v58 = vadd.f32 %v2413_v49, %v2412_v53 }
 0x271   :  { %v5583_v59 = vpop.f32.mrb[2].mxu0 }
 0x272   :  { %v2327_v32 = vpop.f32.mrb[3].mxu0  ;;  %v2417_v61 = vsel %vm69_vm3, %v5583_v59, 0.0 }
 0x273   :  { %v2415_v33 = vsel %vm69_vm3, %v2327_v32, 0.0 }
 0x274   :  { %v2416_v60 = vadd.f32 %v2415_v33, %v2414_v58 }
 0x275   :  { %v5586_v62 = vpop.f32.mrb[4].mxu0 }
 0x276   :  { %v2337_v20 = vpop.f32.mrb[5].mxu0  ;;  %v2418_v34 = vadd.f32 %v2417_v61, %v2416_v60  ;;  %v2421_v0 = vsel %vm69_vm3, %v5586_v62, 0.0 }
 0x277   :  { %v2419_v35 = vsel %vm69_vm3, %v2337_v20, 0.0 }
 0x278   :  { %v2420_v63 = vadd.f32 %v2419_v35, %v2418_v34 }
 0x279   :  { %v5589_v1 = vpop.f32.mrb[6].mxu0 }
 0x27a   :  { %v2347_v3 = vpop.f32.mrb[7].mxu0  ;;  %v2422_v7 = vadd.f32 %v2421_v0, %v2420_v63  ;;  %v2425_v23 = vsel %vm69_vm3, %v5589_v1, 0.0 }
 0x27b   :  { %v2423_v4 = vsel %vm69_vm3, %v2347_v3, 0.0 }
 0x27c   :  { %v2424_v22 = vadd.f32 %v2423_v4, %v2422_v7 }
 0x27d   :  { %v7067_v9 = vpop.f32.mrb[8].mxu0 }
 0x27e   :  { %v2426_v10 = vadd.f32 %v2425_v23, %v2424_v22  ;;  %v2434_v11 = vsel %vm69_vm3, %v7067_v9, 0.0  ;;  %v7071_v12 = vpop.f32.mrb[9].mxu0 }
 0x27f   :  { %v2433_v36 = vsel %vm69_vm3, %v7071_v12, 0.0 }
 0x280   :  { %v2427_v37 = vrot.slane %v2426_v10, 4  ;;  %v2435_v24 = vadd.f32 %v2434_v11, %v2433_v36 }
 0x281   :  { %v7075_v25 = vpop.f32.mrb[10].mxu0 }
 0x282   :  { %v2428_v19 = vadd.f32 %v2427_v37, %v2426_v10  ;;  %v7077_v40 = vpop.f32.mrb[11].mxu0  ;;  %v2438_v26 = vsel %vm69_vm3, %v7075_v25, 0.0 }
 0x283   :  { %v2436_v41 = vsel %vm69_vm3, %v7077_v40, 0.0 }
 0x284   :  { %v2429_v42 = vrot.slane %v2428_v19, 2  ;;  %v2437_v43 = vadd.f32 %v2436_v41, %v2435_v24 }
 0x285   :  { %v7083_v27 = vpop.f32.mrb[12].mxu0 }
 0x286   :  { %v2430_v14 = vadd.f32 %v2429_v42, %v2428_v19  ;;  %v2377_v45 = vpop.f32.mrb[13].mxu0  ;;  %v2439_v46 = vadd.f32 %v2438_v26, %v2437_v43  ;;  %v2442_v29 = vsel %vm69_vm3, %v7083_v27, 0.0 }
 0x287   :  { %v2440_v47 = vsel %vm69_vm3, %v2377_v45, 0.0 }
 0x288   :  { %v2431_v48 = vrot.slane %v2430_v14, 1  ;;  %v2441_v28 = vadd.f32 %v2440_v47, %v2439_v46 }
 0x289   :  { %v5601_v15 = vpop.f32.mrb[14].mxu0 }
 0x28a   :  { %v2432_v16 = vadd.f32 %v2431_v48, %v2430_v14  ;;  %v2387_v51 = vpop.f32.mrb[15].mxu0  ;;  %v2443_v52 = vadd.f32 %v2442_v29, %v2441_v28  ;;  %v2446_v53 = vsel %vm69_vm3, %v5601_v15, 0.0 }
 0x28b   :  { %v2444_v30 = vsel %vm69_vm3, %v2387_v51, 0.0 }
 0x28c   :  { %v2455_v5 = vmul.f32 0.015625, %v2432_v16  ;;  %v2445_v31 = vadd.f32 %v2444_v30, %v2443_v52 }
 0x28e   :  { %v7089_v8 = vsub.f32 %v2317_v2, %v2455_v5  ;;  %v7091_v54 = vsub.f32 %v5580_v13, %v2455_v5  ;;  %v7093_v55 = vsub.f32 %v2327_v32, %v2455_v5  ;;  %v7095_v17 = vsub.f32 %v5583_v59, %v2455_v5 }
 0x28f   :  { %v7097_v18 = vsub.f32 %v2337_v20, %v2455_v5  ;;  %v7099_v57 = vsub.f32 %v5586_v62, %v2455_v5  ;;  %v7101_v6 = vsub.f32 %v2347_v3, %v2455_v5  ;;  %v7103_v38 = vsub.f32 %v5589_v1, %v2455_v5 }
 0x290   :  { %v2473_v44 = vmul.f32 %v7089_v8, %v7089_v8  ;;  %v2474_v50 = vmul.f32 %v7091_v54, %v7091_v54  ;;  %v2475_v56 = vmul.f32 %v7093_v55, %v7093_v55  ;;  %v2476_v21 = vmul.f32 %v7095_v17, %v7095_v17 }
 0x291   :  { %v2477_v58 = vmul.f32 %v7097_v18, %v7097_v18  ;;  %v2447_v32 = vadd.f32 %v2446_v53, %v2445_v31  ;;  %v2478_v60 = vmul.f32 %v7099_v57, %v7099_v57  ;;  %v2479_v34 = vmul.f32 %v7101_v6, %v7101_v6 }
 0x292   :  { %v2489_v13 = vsel %vm69_vm3, %v2473_v44, 0.0  ;;  %v2490_v49 = vsel %vm69_vm3, %v2474_v50, 0.0  ;;  %v2492_v59 = vsel %vm69_vm3, %v2475_v56, 0.0  ;;  %v2494_v61 = vsel %vm69_vm3, %v2476_v21, 0.0 }
 0x293   :  { %v2491_v2 = vadd.f32 %v2490_v49, %v2489_v13  ;;  %v2448_v62 = vrot.slane %v2447_v32, 4  ;;  %v2496_v35 = vsel %vm69_vm3, %v2477_v58, 0.0  ;;  %v2480_v1 = vmul.f32 %v7103_v38, %v7103_v38 }
 0x294   :  { %v2498_v3 = vsel %vm69_vm3, %v2478_v60, 0.0  ;;  %v2500_v22 = vsel %vm69_vm3, %v2479_v34, 0.0 }
 0x295   :  { %v2493_v33 = vadd.f32 %v2492_v59, %v2491_v2  ;;  %v2449_v63 = vadd.f32 %v2448_v62, %v2447_v32  ;;  %v2502_v11 = vsel %vm69_vm3, %v2480_v1, 0.0 }
 0x297   :  { %v2495_v20 = vadd.f32 %v2494_v61, %v2493_v33  ;;  %v2450_v7 = vrot.slane %v2449_v63, 2 }
 0x299   :  { %v2497_v0 = vadd.f32 %v2496_v35, %v2495_v20  ;;  %v2451_v23 = vadd.f32 %v2450_v7, %v2449_v63 }
 0x29b   :  { %v2499_v4 = vadd.f32 %v2498_v3, %v2497_v0  ;;  %v2452_v36 = vrot.slane %v2451_v23, 1 }
 0x29d   :  { %v2501_v10 = vadd.f32 %v2500_v22, %v2499_v4  ;;  %v2453_v24 = vadd.f32 %v2452_v36, %v2451_v23 }
 0x29f   :  { %v2503_v37 = vadd.f32 %v2502_v11, %v2501_v10  ;;  %v2456_v41 = vmul.f32 0.015625, %v2453_v24 }
 0x2a1   :  { %v2504_v19 = vrot.slane %v2503_v37, 4  ;;  %v7131_v43 = vsub.f32 %v7071_v12, %v2456_v41  ;;  %v7134_v26 = vsub.f32 %v7067_v9, %v2456_v41  ;;  %v7137_v14 = vsub.f32 %v7077_v40, %v2456_v41 }
 0x2a2   :  { %v7140_v46 = vsub.f32 %v7075_v25, %v2456_v41  ;;  %v7142_v48 = vsub.f32 %v2377_v45, %v2456_v41  ;;  %v7145_v28 = vsub.f32 %v7083_v27, %v2456_v41  ;;  %v7147_v29 = vsub.f32 %v2387_v51, %v2456_v41 }
 0x2a3   :  { %v2505_v42 = vadd.f32 %v2504_v19, %v2503_v37  ;;  %v7149_v16 = vsub.f32 %v5601_v15, %v2456_v41  ;;  %v2481_v9 = vmul.f32 %v7131_v43, %v7131_v43  ;;  %v2482_v12 = vmul.f32 %v7134_v26, %v7134_v26 }
 0x2a4   :  { %v2483_v25 = vmul.f32 %v7137_v14, %v7137_v14  ;;  %v2484_v45 = vmul.f32 %v7140_v46, %v7140_v46  ;;  %v2485_v30 = vmul.f32 %v7142_v48, %v7142_v48  ;;  %v2486_v50 = vmul.f32 %v7145_v28, %v7145_v28 }
 0x2a5   :  { %v2506_v47 = vrot.slane %v2505_v42, 2  ;;  %v2510_v27 = vsel %vm69_vm3, %v2481_v9, 0.0  ;;  %v2511_v51 = vsel %vm69_vm3, %v2482_v12, 0.0  ;;  %v2487_v49 = vmul.f32 %v7147_v29, %v7147_v29 }
 0x2a6   :  { %v2512_v15 = vadd.f32 %v2511_v51, %v2510_v27  ;;  %v2513_v5 = vsel %vm69_vm3, %v2483_v25, 0.0  ;;  %v2515_v56 = vsel %vm69_vm3, %v2484_v45, 0.0  ;;  %v2517_v2 = vsel %vm69_vm3, %v2485_v30, 0.0  ;;  %v2611_v45 = vld [vmem:[#allocation3 + $0xf8] sm:$0xff] }
 0x2a7   :  { %v2507_v40 = vadd.f32 %v2506_v47, %v2505_v42  ;;  %v2488_v59 = vmul.f32 %v7149_v16, %v7149_v16  ;;  %v2519_v32 = vsel %vm69_vm3, %v2486_v50, 0.0  ;;  %v2521_v60 = vsel %vm69_vm3, %v2487_v49, 0.0  ;;  %v7198_v47 = vld [vmem:[%s7774_s2 + $0x10] sm:$0xff] }
 0x2a8   :  { %v2514_v44 = vadd.f32 %v2513_v5, %v2512_v15 }
 0x2a9   :  { %v2508_v52 = vrot.slane %v2507_v40, 1  ;;  %v2523_v62 = vsel %vm69_vm3, %v2488_v59, 0.0  ;;  %v2586_v59 = vld [vmem:[#allocation3 + $0x7] sm:$0xff] }
 0x2aa   :  { %v2516_v13 = vadd.f32 %v2515_v56, %v2514_v44 }
 0x2ab   :  { %v2509_v31 = vadd.f32 %v2508_v52, %v2507_v40 }
 0x2ac   :  { %v2518_v58 = vadd.f32 %v2517_v2, %v2516_v13 }
 0x2ad   :  { %v2531_v21 = vmul.f32 0.015625, %v2509_v31 }
 0x2ae   :  { %v2520_v33 = vadd.f32 %v2519_v32, %v2518_v58 }
 0x2af   :  { %v2533_v53 = vadd.f32 1e-05, %v2531_v21 }
 0x2b0   :  { %v2522_v61 = vadd.f32 %v2521_v60, %v2520_v33  ;;  %v3248_v60 = vld [vmem:[%s7774_s2 + $0x18] sm:$0xff] }
 0x2b1   :  { %6094 = vrsqrt.f32 %v2533_v53 }
 0x2b2   :  { %v2524_v20 = vadd.f32 %v2523_v62, %v2522_v61 }
 0x2b4   :  { %v2525_v34 = vrot.slane %v2524_v20, 4 }
 0x2b6   :  { %v2526_v35 = vadd.f32 %v2525_v34, %v2524_v20 }
 0x2b8   :  { %v2527_v0 = vrot.slane %v2526_v35, 2 }
 0x2bb   :  { %v6095_v63 = vpop.eup %6094 }
 0x2bc   :  { %v2537_v1 = vmul.f32 %v6095_v63, %v7089_v8  ;;  %v2538_v3 = vmul.f32 %v6095_v63, %v7091_v54  ;;  %v2539_v7 = vmul.f32 %v6095_v63, %v7093_v55  ;;  %v2540_v4 = vmul.f32 %v6095_v63, %v7095_v17 }
 0x2bd   :  { %v2541_v22 = vmul.f32 %v6095_v63, %v7097_v18  ;;  %v2542_v23 = vmul.f32 %v6095_v63, %v7099_v57  ;;  %v2543_v10 = vmul.f32 %v6095_v63, %v7101_v6  ;;  %v2544_v11 = vmul.f32 %v6095_v63, %v7103_v38  ;;  %v2594_v63 = vld [vmem:[#allocation3 + $0xf7] sm:$0xff] }
 0x2be   :  { %v2553_v36 = vmax.f32 %v2537_v1, 0.0  ;;  %v2554_v37 = vmax.f32 %v2538_v3, 0.0  ;;  %v2555_v24 = vmax.f32 %v2539_v7, 0.0  ;;  %v2556_v19 = vmax.f32 %v2540_v4, 0.0 }
 0x2bf   :  { %v2557_v41 = vmax.f32 %v2541_v22, 0.0  ;;  %v2558_v8 = vmax.f32 %v2542_v23, 0.0  ;;  %v2559_v42 = vmax.f32 %v2543_v10, 0.0  ;;  %v2560_v54 = vmax.f32 %v2544_v11, 0.0  ;;  %v3006_v10 = vld [vmem:[#allocation3 + $0x9] sm:$0xff] }
 0x2c0   :  { %2570 = vst.msk [vmem:[#allocation3 + $0x20] sm:$0xff] %vm69_vm3, %v2553_v36  ;;  %2571 = vst.msk [vmem:[#allocation3 + $0x38] sm:$0xff] %vm69_vm3, %v2554_v37  ;;  %v2528_v55 = vadd.f32 %v2527_v0, %v2526_v35  ;;  %v3474_v37 = vld [vmem:[%s7774_s2 + $0x20] sm:$0xff] }
 0x2c1   :  { %2572 = vst.msk [vmem:[#allocation3 + $0x50] sm:$0xff] %vm69_vm3, %v2555_v24  ;;  %2573 = vst.msk [vmem:[#allocation3 + $0x68] sm:$0xff] %vm69_vm3, %v2556_v19 }
 0x2c2   :  { %2574 = vst.msk [vmem:[#allocation3 + $0x80] sm:$0xff] %vm69_vm3, %v2557_v41  ;;  %2575 = vst.msk [vmem:[#allocation3 + $0x98] sm:$0xff] %vm69_vm3, %v2558_v8  ;;  %v2529_v17 = vrot.slane %v2528_v55, 1 }
 0x2c3   :  { %2576 = vst.msk [vmem:[#allocation3 + $0xb0] sm:$0xff] %vm69_vm3, %v2559_v42  ;;  %2577 = vst.msk [vmem:[#allocation3 + $0xc8] sm:$0xff] %vm69_vm3, %v2560_v54  ;;  %v3014_v54 = vld [vmem:[#allocation3 + $0xf9] sm:$0xff] }
 0x2c4   :  { %v2530_v18 = vadd.f32 %v2529_v17, %v2528_v55 }
 0x2c6   :  { %v2532_v57 = vmul.f32 0.015625, %v2530_v18 }
 0x2c7   :  { %v7191_v6 = vld [vmem:[#allocation3 + $0x20] sm:$0xff]  ;;  %v7193_v38 = vld [vmem:[#allocation3 + $0x38] sm:$0xff] }
 0x2c8   :  { %v2534_v9 = vadd.f32 1e-05, %v2532_v57  ;;  %5605 = vmatmul.mubr.msk.f32.vlgmr.msra.gmra.mrb[0].mxu1 %vm69_vm3, %v7191_v6  ;;  %v7206_v12 = vld [vmem:[#allocation3 + $0x50] sm:$0xff]  ;;  %v7210_v25 = vld [vmem:[#allocation3 + $0x68] sm:$0xff]  ;;  %v7272_v33 = vld [vmem:[#allocation3 + $0x1f] sm:$0xff] }
 0x2c9   :  { %5629 = vmatpush3.msra.mxu1 %v7056_v39  ;;  %5607 = vmatprep.mubr.msk.f32.mxu1 %vm69_vm3, %v7193_v38  ;;  %v7214_v40 = vld [vmem:[#allocation3 + $0x80] sm:$0xff]  ;;  %v7218_v39 = vld [vmem:[#allocation3 + $0x98] sm:$0xff]  ;;  %v7284_v62 = vld [vmem:[#allocation3 + $0x4f] sm:$0xff] }
 0x2ca   :  { %6096 = vrsqrt.f32 %v2534_v9  ;;  %5654 = vmatprep.subr.mxu1 %v7198_v47  ;;  %v7222_v27 = vld [vmem:[#allocation3 + $0xb0] sm:$0xff]  ;;  %v7288_v20 = vld [vmem:[#allocation3 + $0x67] sm:$0xff]  ;;  %v7292_v34 = vld [vmem:[#allocation3 + $0x7f] sm:$0xff] }
 0x2cb   :  { %v7279_v61 = vld [vmem:[#allocation3 + $0x37] sm:$0xff]  ;;  %v7300_v0 = vld [vmem:[#allocation3 + $0xaf] sm:$0xff]  ;;  %v7331_v36 = vld [vmem:[#allocation3 + $0x21] sm:$0xff] }
 0x2cc   :  { %5608 = vmatmul.mubr.msk.f32.gmra.mrb[2].mxu1 %vm69_vm3, %v7206_v12  ;;  %v7296_v35 = vld [vmem:[#allocation3 + $0x97] sm:$0xff]  ;;  %v7346_v41 = vld [vmem:[#allocation3 + $0x69] sm:$0xff]  ;;  %v7350_v8 = vld [vmem:[#allocation3 + $0x81] sm:$0xff] }
 0x2cd   :  { %5610 = vmatprep.mubr.msk.f32.mxu1 %vm69_vm3, %v7210_v25  ;;  %v7338_v24 = vld [vmem:[#allocation3 + $0x39] sm:$0xff]  ;;  %v7342_v19 = vld [vmem:[#allocation3 + $0x51] sm:$0xff] }
 0x2ce   :  { %v7354_v42 = vld [vmem:[#allocation3 + $0x99] sm:$0xff]  ;;  %v7358_v55 = vld [vmem:[#allocation3 + $0xb1] sm:$0xff] }
 0x2d0   :  { %5611 = vmatmul.mubr.msk.f32.gmra.mrb[4].mxu1 %vm69_vm3, %v7214_v40 }
 0x2d1   :  { %5613 = vmatprep.mubr.msk.f32.mxu1 %vm69_vm3, %v7218_v39 }
 0x2d4   :  { %v6097_v51 = vpop.eup %6096  ;;  %5614 = vmatmul.mubr.msk.f32.gmra.mrb[6].mxu1 %vm69_vm3, %v7222_v27 }
 0x2d5   :  { %v2545_v52 = vmul.f32 %v6097_v51, %v7131_v43  ;;  %v2546_v15 = vmul.f32 %v6097_v51, %v7134_v26  ;;  %v2547_v30 = vmul.f32 %v6097_v51, %v7137_v14  ;;  %v2548_v5 = vmul.f32 %v6097_v51, %v7140_v46  ;;  %5616 = vmatprep.mubr.msk.f32.mxu1 %vm69_vm3, %v2611_v45 }
 0x2d6   :  { %v2549_v31 = vmul.f32 %v6097_v51, %v7142_v48  ;;  %v2550_v44 = vmul.f32 %v6097_v51, %v7145_v28  ;;  %v2551_v50 = vmul.f32 %v6097_v51, %v7147_v29  ;;  %v2552_v56 = vmul.f32 %v6097_v51, %v7149_v16 }
 0x2d7   :  { %v2561_v21 = vmax.f32 %v2545_v52, 0.0  ;;  %v2562_v13 = vmax.f32 %v2546_v15, 0.0  ;;  %v2563_v49 = vmax.f32 %v2547_v30, 0.0  ;;  %v2564_v43 = vmax.f32 %v2548_v5, 0.0  ;;  %v3700_v52 = vld [vmem:[%s7774_s2 + $0x28] sm:$0xff]  ;;  %v3927_v5 = vld [vmem:[%s7774_s2 + $0x30] sm:$0xff] }
 0x2d8   :  { %v2565_v2 = vmax.f32 %v2549_v31, 0.0  ;;  %v2566_v26 = vmax.f32 %v2550_v44, 0.0  ;;  %v2567_v53 = vmax.f32 %v2551_v50, 0.0  ;;  %v2568_v14 = vmax.f32 %v2552_v56, 0.0  ;;  %v3239_v15 = vld [vmem:[#allocation3 + $0xc7] sm:$0xff]  ;;  %v4153_v44 = vld [vmem:[%s7774_s2 + $0x38] sm:$0xff] }
 0x2d9   :  { %2578 = vst.msk [vmem:[#allocation3 + $0x110] sm:$0xff] %vm69_vm3, %v2561_v21  ;;  %2579 = vst.msk [vmem:[#allocation3 + $0x128] sm:$0xff] %vm69_vm3, %v2562_v13  ;;  %v3691_v50 = vld [vmem:[#allocation3 + $0xc9] sm:$0xff]  ;;  %v4379_v21 = vld [vmem:[%s7774_s2 + $0x40] sm:$0xff] }
 0x2da   :  { %2580 = vst.msk [vmem:[#allocation3 + $0x140] sm:$0xff] %vm69_vm3, %v2563_v49  ;;  %2581 = vst.msk [vmem:[#allocation3 + $0x158] sm:$0xff] %vm69_vm3, %v2564_v43  ;;  %v3918_v13 = vld [vmem:[#allocation3 + $0xdf] sm:$0xff]  ;;  %v3926_v49 = vld [vmem:[#allocation3 + $0x1cf] sm:$0xff] }
 0x2db   :  { %2582 = vst.msk [vmem:[#allocation3 + $0x170] sm:$0xff] %vm69_vm3, %v2565_v2  ;;  %2583 = vst.msk [vmem:[#allocation3 + $0x188] sm:$0xff] %vm69_vm3, %v2566_v26  ;;  %v4144_v43 = vld [vmem:[#allocation3 + $0xe0] sm:$0xff] }
 0x2dc   :  { %2584 = vst.msk [vmem:[#allocation3 + $0x1a0] sm:$0xff] %vm69_vm3, %v2567_v53  ;;  %2585 = vst.msk [vmem:[#allocation3 + $0x1b8] sm:$0xff] %vm69_vm3, %v2568_v14 }
 0x2e0   :  { %v7243_v46 = vld [vmem:[#allocation3 + $0x110] sm:$0xff]  ;;  %v7245_v48 = vld [vmem:[#allocation3 + $0x128] sm:$0xff] }
 0x2e1   :  { %5617 = vmatmul.mubr.msk.f32.gmra.mrb[8].mxu1 %vm69_vm3, %v7243_v46  ;;  %v7251_v28 = vld [vmem:[#allocation3 + $0x140] sm:$0xff]  ;;  %v7255_v29 = vld [vmem:[#allocation3 + $0x158] sm:$0xff]  ;;  %v2595_v1 = vld [vmem:[#allocation3 + $0x10f] sm:$0xff] }
 0x2e2   :  { %5619 = vmatprep.mubr.msk.f32.mxu1 %vm69_vm3, %v7245_v48  ;;  %v7259_v16 = vld [vmem:[#allocation3 + $0x170] sm:$0xff]  ;;  %v7263_v58 = vld [vmem:[#allocation3 + $0x188] sm:$0xff]  ;;  %v7310_v7 = vld [vmem:[#allocation3 + $0x13f] sm:$0xff] }
 0x2e3   :  { %v7267_v32 = vld [vmem:[#allocation3 + $0x1a0] sm:$0xff]  ;;  %v7314_v4 = vld [vmem:[#allocation3 + $0x157] sm:$0xff]  ;;  %v7318_v22 = vld [vmem:[#allocation3 + $0x16f] sm:$0xff] }
 0x2e4   :  { %v7306_v3 = vld [vmem:[#allocation3 + $0x127] sm:$0xff]  ;;  %v7326_v11 = vld [vmem:[#allocation3 + $0x19f] sm:$0xff]  ;;  %v7363_v17 = vld [vmem:[#allocation3 + $0x111] sm:$0xff] }
 0x2e5   :  { %5620 = vmatmul.mubr.msk.f32.gmra.mrb[10].mxu1 %vm69_vm3, %v7251_v28  ;;  %v7322_v23 = vld [vmem:[#allocation3 + $0x187] sm:$0xff]  ;;  %v7379_v9 = vld [vmem:[#allocation3 + $0x171] sm:$0xff]  ;;  %v3699_v56 = vld [vmem:[#allocation3 + $0x1b9] sm:$0xff] }
 0x2e6   :  { %5622 = vmatprep.mubr.msk.f32.mxu1 %vm69_vm3, %v7255_v29  ;;  %v7367_v18 = vld [vmem:[#allocation3 + $0x129] sm:$0xff]  ;;  %v7371_v57 = vld [vmem:[#allocation3 + $0x141] sm:$0xff]  ;;  %v3247_v30 = vld [vmem:[#allocation3 + $0x1b7] sm:$0xff] }
 0x2e7   :  { %v7383_v45 = vld [vmem:[#allocation3 + $0x189] sm:$0xff]  ;;  %v7387_v51 = vld [vmem:[#allocation3 + $0x1a1] sm:$0xff]  ;;  %v3473_v31 = vld [vmem:[#allocation3 + $0x1b8] sm:$0xff] }
 0x2e9   :  { %5623 = vmatmul.mubr.msk.f32.gmra.mrb[12].mxu1 %vm69_vm3, %v7259_v16 }
 0x2ea   :  { %5625 = vmatprep.mubr.msk.f32.mxu1 %vm69_vm3, %v7263_v58 }
 0x2ed   :  { %5626 = vmatmul.mubr.msk.f32.gmra.mrb[14].mxu1 %vm69_vm3, %v7267_v32 }
 0x2ee   :  { %5630 = vmatprep.mubr.msk.f32.mxu1 %vm69_vm3, %v2586_v59 }
 0x2f1   :  { %5631 = vmatmul.mubr.msk.f32.vlgmr.msra.gmra.mrb[0].mxu1 %vm69_vm3, %v7272_v33 }
 0x2f2   :  { %5655 = vmatpush3.msra.mxu1 %v7198_v47  ;;  %5633 = vmatprep.mubr.msk.f32.mxu1 %vm69_vm3, %v7279_v61  ;;  %v7375_v47 = vld [vmem:[#allocation3 + $0x159] sm:$0xff] }
 0x2f3   :  { %5680 = vmatprep.subr.mxu1 %v3248_v60 }
 0x2f5   :  { %5634 = vmatmul.mubr.msk.f32.gmra.mrb[2].mxu1 %vm69_vm3, %v7284_v62 }
 0x2f6   :  { %5636 = vmatprep.mubr.msk.f32.mxu1 %vm69_vm3, %v7288_v20 }
 0x2f9   :  { %5637 = vmatmul.mubr.msk.f32.gmra.mrb[4].mxu1 %vm69_vm3, %v7292_v34 }
 0x2fa   :  { %5639 = vmatprep.mubr.msk.f32.mxu1 %vm69_vm3, %v7296_v35 }
 0x2fd   :  { %5640 = vmatmul.mubr.msk.f32.gmra.mrb[6].mxu1 %vm69_vm3, %v7300_v0 }
 0x2fe   :  { %5642 = vmatprep.mubr.msk.f32.mxu1 %vm69_vm3, %v2594_v63 }
 0x301   :  { %5643 = vmatmul.mubr.msk.f32.gmra.mrb[8].mxu1 %vm69_vm3, %v2595_v1 }
 0x302   :  { %5645 = vmatprep.mubr.msk.f32.mxu1 %vm69_vm3, %v7306_v3 }
 0x305   :  { %5646 = vmatmul.mubr.msk.f32.gmra.mrb[10].mxu1 %vm69_vm3, %v7310_v7 }
 0x306   :  { %5648 = vmatprep.mubr.msk.f32.mxu1 %vm69_vm3, %v7314_v4 }
 0x309   :  { %5649 = vmatmul.mubr.msk.f32.gmra.mrb[12].mxu1 %vm69_vm3, %v7318_v22 }
 0x30a   :  { %5651 = vmatprep.mubr.msk.f32.mxu1 %vm69_vm3, %v7322_v23 }
 0x30d   :  { %5652 = vmatmul.mubr.msk.f32.gmra.mrb[14].mxu1 %vm69_vm3, %v7326_v11 }
 0x30e   :  { %5656 = vmatprep.mubr.msk.f32.mxu1 %vm69_vm3, %v3006_v10 }
 0x311   :  { %5657 = vmatmul.mubr.msk.f32.vlgmr.msra.gmra.mrb[0].mxu1 %vm69_vm3, %v7331_v36 }
 0x312   :  { %5681 = vmatpush3.msra.mxu1 %v3248_v60  ;;  %5659 = vmatprep.mubr.msk.f32.mxu1 %vm69_vm3, %v7338_v24 }
 0x313   :  { %5706 = vmatprep.subr.mxu1 %v3474_v37 }
 0x315   :  { %5660 = vmatmul.mubr.msk.f32.gmra.mrb[2].mxu1 %vm69_vm3, %v7342_v19 }
 0x316   :  { %5662 = vmatprep.mubr.msk.f32.mxu1 %vm69_vm3, %v7346_v41 }
 0x319   :  { %5663 = vmatmul.mubr.msk.f32.gmra.mrb[4].mxu1 %vm69_vm3, %v7350_v8 }
 0x31a   :  { %5665 = vmatprep.mubr.msk.f32.mxu1 %vm69_vm3, %v7354_v42 }
 0x31d   :  { %5666 = vmatmul.mubr.msk.f32.gmra.mrb[6].mxu1 %vm69_vm3, %v7358_v55 }
 0x31e   :  { %5668 = vmatprep.mubr.msk.f32.mxu1 %vm69_vm3, %v3014_v54 }
 0x321   :  { %5669 = vmatmul.mubr.msk.f32.gmra.mrb[8].mxu1 %vm69_vm3, %v7363_v17 }
 0x322   :  { %5671 = vmatprep.mubr.msk.f32.mxu1 %vm69_vm3, %v7367_v18 }
 0x325   :  { %5672 = vmatmul.mubr.msk.f32.gmra.mrb[10].mxu1 %vm69_vm3, %v7371_v57 }
 0x326   :  { %5674 = vmatprep.mubr.msk.f32.mxu1 %vm69_vm3, %v7375_v47 }
 0x329   :  { %5675 = vmatmul.mubr.msk.f32.gmra.mrb[12].mxu1 %vm69_vm3, %v7379_v9 }
 0x32a   :  { %5677 = vmatprep.mubr.msk.f32.mxu1 %vm69_vm3, %v7383_v45 }
 0x32d   :  { %5678 = vmatmul.mubr.msk.f32.gmra.mrb[14].mxu1 %vm69_vm3, %v7387_v51 }
 0x32e   :  { %5682 = vmatprep.mubr.msk.f32.mxu1 %vm69_vm3, %v7272_v33 }
 0x331   :  { %5683 = vmatmul.mubr.msk.f32.vlgmr.msra.gmra.mrb[0].mxu1 %vm69_vm3, %v7279_v61 }
 0x332   :  { %5707 = vmatpush3.msra.mxu1 %v3474_v37  ;;  %5685 = vmatprep.mubr.msk.f32.mxu1 %vm69_vm3, %v7284_v62 }
 0x333   :  { %5732 = vmatprep.subr.mxu1 %v3700_v52 }
 0x335   :  { %5686 = vmatmul.mubr.msk.f32.gmra.mrb[2].mxu1 %vm69_vm3, %v7288_v20 }
 0x336   :  { %5688 = vmatprep.mubr.msk.f32.mxu1 %vm69_vm3, %v7292_v34 }
 0x339   :  { %5689 = vmatmul.mubr.msk.f32.gmra.mrb[4].mxu1 %vm69_vm3, %v7296_v35 }
 0x33a   :  { %5691 = vmatprep.mubr.msk.f32.mxu1 %vm69_vm3, %v7300_v0 }
 0x33d   :  { %5692 = vmatmul.mubr.msk.f32.gmra.mrb[6].mxu1 %vm69_vm3, %v3239_v15 }
 0x33e   :  { %5694 = vmatprep.mubr.msk.f32.mxu1 %vm69_vm3, %v2595_v1 }
 0x341   :  { %5695 = vmatmul.mubr.msk.f32.gmra.mrb[8].mxu1 %vm69_vm3, %v7306_v3 }
 0x342   :  { %5697 = vmatprep.mubr.msk.f32.mxu1 %vm69_vm3, %v7310_v7 }
 0x345   :  { %5698 = vmatmul.mubr.msk.f32.gmra.mrb[10].mxu1 %vm69_vm3, %v7314_v4 }
 0x346   :  { %5700 = vmatprep.mubr.msk.f32.mxu1 %vm69_vm3, %v7318_v22 }
 0x349   :  { %5701 = vmatmul.mubr.msk.f32.gmra.mrb[12].mxu1 %vm69_vm3, %v7322_v23 }
 0x34a   :  { %5703 = vmatprep.mubr.msk.f32.mxu1 %vm69_vm3, %v7326_v11 }
 0x34d   :  { %5704 = vmatmul.mubr.msk.f32.gmra.mrb[14].mxu1 %vm69_vm3, %v3247_v30 }
 0x34e   :  { %5708 = vmatprep.mubr.msk.f32.mxu1 %vm69_vm3, %v7191_v6  ;;  %v3465_v6 = vld [vmem:[#allocation3 + $0xc8] sm:$0xff] }
 0x351   :  { %5709 = vmatmul.mubr.msk.f32.vlgmr.msra.gmra.mrb[0].mxu1 %vm69_vm3, %v7193_v38 }
 0x352   :  { %5733 = vmatpush3.msra.mxu1 %v3700_v52  ;;  %5711 = vmatprep.mubr.msk.f32.mxu1 %vm69_vm3, %v7206_v12 }
 0x353   :  { %5758 = vmatprep.subr.mxu1 %v3927_v5 }
 0x355   :  { %5712 = vmatmul.mubr.msk.f32.gmra.mrb[2].mxu1 %vm69_vm3, %v7210_v25 }
 0x356   :  { %5714 = vmatprep.mubr.msk.f32.mxu1 %vm69_vm3, %v7214_v40 }
 0x359   :  { %5715 = vmatmul.mubr.msk.f32.gmra.mrb[4].mxu1 %vm69_vm3, %v7218_v39 }
 0x35a   :  { %5717 = vmatprep.mubr.msk.f32.mxu1 %vm69_vm3, %v7222_v27 }
 0x35d   :  { %5718 = vmatmul.mubr.msk.f32.gmra.mrb[6].mxu1 %vm69_vm3, %v3465_v6 }
 0x35e   :  { %5720 = vmatprep.mubr.msk.f32.mxu1 %vm69_vm3, %v7243_v46 }
 0x361   :  { %5721 = vmatmul.mubr.msk.f32.gmra.mrb[8].mxu1 %vm69_vm3, %v7245_v48 }
 0x362   :  { %5723 = vmatprep.mubr.msk.f32.mxu1 %vm69_vm3, %v7251_v28 }
 0x365   :  { %5724 = vmatmul.mubr.msk.f32.gmra.mrb[10].mxu1 %vm69_vm3, %v7255_v29 }
 0x366   :  { %5726 = vmatprep.mubr.msk.f32.mxu1 %vm69_vm3, %v7259_v16 }
 0x369   :  { %5727 = vmatmul.mubr.msk.f32.gmra.mrb[12].mxu1 %vm69_vm3, %v7263_v58 }
 0x36a   :  { %5729 = vmatprep.mubr.msk.f32.mxu1 %vm69_vm3, %v7267_v32 }
 0x36d   :  { %5730 = vmatmul.mubr.msk.f32.gmra.mrb[14].mxu1 %vm69_vm3, %v3473_v31 }
 0x36e   :  { %5734 = vmatprep.mubr.msk.f32.mxu1 %vm69_vm3, %v7331_v36 }
 0x371   :  { %5735 = vmatmul.mubr.msk.f32.vlgmr.msra.gmra.mrb[0].mxu1 %vm69_vm3, %v7338_v24 }
 0x372   :  { %5759 = vmatpush3.msra.mxu1 %v3927_v5  ;;  %5737 = vmatprep.mubr.msk.f32.mxu1 %vm69_vm3, %v7342_v19 }
 0x373   :  { %5784 = vmatprep.subr.mxu1 %v4153_v44 }
 0x375   :  { %5738 = vmatmul.mubr.msk.f32.gmra.mrb[2].mxu1 %vm69_vm3, %v7346_v41 }
 0x376   :  { %5740 = vmatprep.mubr.msk.f32.mxu1 %vm69_vm3, %v7350_v8 }
 0x379   :  { %5741 = vmatmul.mubr.msk.f32.gmra.mrb[4].mxu1 %vm69_vm3, %v7354_v42 }
 0x37a   :  { %5743 = vmatprep.mubr.msk.f32.mxu1 %vm69_vm3, %v7358_v55 }
 0x37d   :  { %5744 = vmatmul.mubr.msk.f32.gmra.mrb[6].mxu1 %vm69_vm3, %v3691_v50 }
 0x37e   :  { %5746 = vmatprep.mubr.msk.f32.mxu1 %vm69_vm3, %v7363_v17 }
 0x381   :  { %5747 = vmatmul.mubr.msk.f32.gmra.mrb[8].mxu1 %vm69_vm3, %v7367_v18 }
 0x382   :  { %5749 = vmatprep.mubr.msk.f32.mxu1 %vm69_vm3, %v7371_v57 }
 0x385   :  { %5750 = vmatmul.mubr.msk.f32.gmra.mrb[10].mxu1 %vm69_vm3, %v7375_v47 }
 0x386   :  { %5752 = vmatprep.mubr.msk.f32.mxu1 %vm69_vm3, %v7379_v9 }
 0x389   :  { %5753 = vmatmul.mubr.msk.f32.gmra.mrb[12].mxu1 %vm69_vm3, %v7383_v45 }
 0x38a   :  { %5755 = vmatprep.mubr.msk.f32.mxu1 %vm69_vm3, %v7387_v51 }
 0x38d   :  { %5756 = vmatmul.mubr.msk.f32.gmra.mrb[14].mxu1 %vm69_vm3, %v3699_v56 }
 0x38e   :  { %5760 = vmatprep.mubr.msk.f32.mxu1 %vm69_vm3, %v7279_v61 }
 0x391   :  { %5761 = vmatmul.mubr.msk.f32.vlgmr.msra.gmra.mrb[0].mxu1 %vm69_vm3, %v7284_v62 }
 0x392   :  { %5785 = vmatpush3.msra.mxu1 %v4153_v44  ;;  %5763 = vmatprep.mubr.msk.f32.mxu1 %vm69_vm3, %v7288_v20 }
 0x393   :  { %5810 = vmatprep.subr.mxu1 %v4379_v21 }
 0x395   :  { %5764 = vmatmul.mubr.msk.f32.gmra.mrb[2].mxu1 %vm69_vm3, %v7292_v34 }
 0x396   :  { %5766 = vmatprep.mubr.msk.f32.mxu1 %vm69_vm3, %v7296_v35 }
 0x399   :  { %5767 = vmatmul.mubr.msk.f32.gmra.mrb[4].mxu1 %vm69_vm3, %v7300_v0 }
 0x39a   :  { %5769 = vmatprep.mubr.msk.f32.mxu1 %vm69_vm3, %v3239_v15 }
 0x39d   :  { %5770 = vmatmul.mubr.msk.f32.gmra.mrb[6].mxu1 %vm69_vm3, %v3918_v13 }
 0x39e   :  { %5772 = vmatprep.mubr.msk.f32.mxu1 %vm69_vm3, %v7306_v3 }
 0x3a1   :  { %5773 = vmatmul.mubr.msk.f32.gmra.mrb[8].mxu1 %vm69_vm3, %v7310_v7 }
 0x3a2   :  { %5775 = vmatprep.mubr.msk.f32.mxu1 %vm69_vm3, %v7314_v4 }
 0x3a5   :  { %5776 = vmatmul.mubr.msk.f32.gmra.mrb[10].mxu1 %vm69_vm3, %v7318_v22 }
 0x3a6   :  { %5778 = vmatprep.mubr.msk.f32.mxu1 %vm69_vm3, %v7322_v23 }
 0x3a9   :  { %5779 = vmatmul.mubr.msk.f32.gmra.mrb[12].mxu1 %vm69_vm3, %v7326_v11 }
 0x3aa   :  { %5781 = vmatprep.mubr.msk.f32.mxu1 %vm69_vm3, %v3247_v30 }
 0x3ad   :  { %5782 = vmatmul.mubr.msk.f32.gmra.mrb[14].mxu1 %vm69_vm3, %v3926_v49 }
 0x3ae   :  { %5786 = vmatprep.mubr.msk.f32.mxu1 %vm69_vm3, %v7193_v38  ;;  %v4152_v38 = vld [vmem:[#allocation3 + $0x1d0] sm:$0xff] }
 0x3b1   :  { %5787 = vmatmul.mubr.msk.f32.vlgmr.msra.gmra.mrb[0].mxu1 %vm69_vm3, %v7206_v12  ;;  %v4370_v12 = vld [vmem:[#allocation3 + $0xe1] sm:$0xff] }
 0x3b2   :  { %5811 = vmatpush3.msra.mxu1 %v4379_v21  ;;  %5789 = vmatprep.mubr.msk.f32.mxu1 %vm69_vm3, %v7210_v25  ;;  %v4378_v25 = vld [vmem:[#allocation3 + $0x1d1] sm:$0xff] }
 0x3b5   :  { %5790 = vmatmul.mubr.msk.f32.gmra.mrb[2].mxu1 %vm69_vm3, %v7214_v40 }
 0x3b6   :  { %5792 = vmatprep.mubr.msk.f32.mxu1 %vm69_vm3, %v7218_v39 }
 0x3b9   :  { %5793 = vmatmul.mubr.msk.f32.gmra.mrb[4].mxu1 %vm69_vm3, %v7222_v27 }
 0x3ba   :  { %5795 = vmatprep.mubr.msk.f32.mxu1 %vm69_vm3, %v3465_v6 }
 0x3bd   :  { %5796 = vmatmul.mubr.msk.f32.gmra.mrb[6].mxu1 %vm69_vm3, %v4144_v43 }
 0x3be   :  { %5798 = vmatprep.mubr.msk.f32.mxu1 %vm69_vm3, %v7245_v48 }
 0x3c1   :  { %5799 = vmatmul.mubr.msk.f32.gmra.mrb[8].mxu1 %vm69_vm3, %v7251_v28 }
 0x3c2   :  { %5801 = vmatprep.mubr.msk.f32.mxu1 %vm69_vm3, %v7255_v29 }
 0x3c5   :  { %5802 = vmatmul.mubr.msk.f32.gmra.mrb[10].mxu1 %vm69_vm3, %v7259_v16 }
 0x3c6   :  { %5804 = vmatprep.mubr.msk.f32.mxu1 %vm69_vm3, %v7263_v58 }
 0x3c9   :  { %5805 = vmatmul.mubr.msk.f32.gmra.mrb[12].mxu1 %vm69_vm3, %v7267_v32 }
 0x3ca   :  { %5807 = vmatprep.mubr.msk.f32.mxu1 %vm69_vm3, %v3473_v31 }
 0x3cd   :  { %5808 = vmatmul.mubr.msk.f32.gmra.mrb[14].mxu1 %vm69_vm3, %v4152_v38 }
 0x3ce   :  { %5812 = vmatprep.mubr.msk.f32.mxu1 %vm69_vm3, %v7338_v24 }
 0x3d1   :  { %5813 = vmatmul.mubr.msk.f32.vlgmr.msra.gmra.mrb[0].mxu1 %vm69_vm3, %v7342_v19 }
 0x3d2   :  { %5815 = vmatprep.mubr.msk.f32.mxu1 %vm69_vm3, %v7346_v41 }
 0x3d5   :  { %5816 = vmatmul.mubr.msk.f32.gmra.mrb[2].mxu1 %vm69_vm3, %v7350_v8 }
 0x3d6   :  { %5818 = vmatprep.mubr.msk.f32.mxu1 %vm69_vm3, %v7354_v42 }
 0x3d9   :  { %5819 = vmatmul.mubr.msk.f32.gmra.mrb[4].mxu1 %vm69_vm3, %v7358_v55 }
 0x3da   :  { %5821 = vmatprep.mubr.msk.f32.mxu1 %vm69_vm3, %v3691_v50 }
 0x3dd   :  { %5822 = vmatmul.mubr.msk.f32.gmra.mrb[6].mxu1 %vm69_vm3, %v4370_v12 }
 0x3de   :  { %5824 = vmatprep.mubr.msk.f32.mxu1 %vm69_vm3, %v7367_v18 }
 0x3e1   :  { %5825 = vmatmul.mubr.msk.f32.gmra.mrb[8].mxu1 %vm69_vm3, %v7371_v57 }
 0x3e2   :  { %5827 = vmatprep.mubr.msk.f32.mxu1 %vm69_vm3, %v7375_v47 }
 0x3e5   :  { %5828 = vmatmul.mubr.msk.f32.gmra.mrb[10].mxu1 %vm69_vm3, %v7379_v9 }
 0x3e6   :  { %5830 = vmatprep.mubr.msk.f32.mxu1 %vm69_vm3, %v7383_v45 }
 0x3e9   :  { %5831 = vmatmul.mubr.msk.f32.gmra.mrb[12].mxu1 %vm69_vm3, %v7387_v51 }
 0x3ea   :  { %5833 = vmatprep.mubr.msk.f32.mxu1 %vm69_vm3, %v3699_v56 }
 0x3ed   :  { %5834 = vmatmul.mubr.msk.f32.gmra.mrb[14].mxu1 %vm69_vm3, %v4378_v25 }
 0x4a4   :  { %v5814_v40 = vpop.f32.mrb[0].mxu1 }
 0x4a5   :  { %v4590_v39 = vsel %vm69_vm3, %v5814_v40, 0.0  ;;  %v4494_v27 = vpop.f32.mrb[1].mxu1 }
 0x4a6   :  { %v4589_v2 = vsel %vm69_vm3, %v4494_v27, 0.0 }
 0x4a7   :  { %v4591_v26 = vadd.f32 %v4590_v39, %v4589_v2 }
 0x4a8   :  { %v5817_v53 = vpop.f32.mrb[2].mxu1 }
 0x4a9   :  { %v4504_v14 = vpop.f32.mrb[3].mxu1  ;;  %v4594_v28 = vsel %vm69_vm3, %v5817_v53, 0.0 }
 0x4aa   :  { %v4592_v46 = vsel %vm69_vm3, %v4504_v14, 0.0 }
 0x4ab   :  { %v4593_v48 = vadd.f32 %v4592_v46, %v4591_v26 }
 0x4ac   :  { %v5820_v29 = vpop.f32.mrb[4].mxu1 }
 0x4ad   :  { %v4514_v16 = vpop.f32.mrb[5].mxu1  ;;  %v4595_v58 = vadd.f32 %v4594_v28, %v4593_v48  ;;  %v4598_v33 = vsel %vm69_vm3, %v5820_v29, 0.0 }
 0x4ae   :  { %v4596_v59 = vsel %vm69_vm3, %v4514_v16, 0.0 }
 0x4af   :  { %v4597_v32 = vadd.f32 %v4596_v59, %v4595_v58 }
 0x4b0   :  { %v5823_v60 = vpop.f32.mrb[6].mxu1 }
 0x4b1   :  { %v4524_v61 = vpop.f32.mrb[7].mxu1  ;;  %v4599_v62 = vadd.f32 %v4598_v33, %v4597_v32  ;;  %v4602_v35 = vsel %vm69_vm3, %v5823_v60, 0.0 }
 0x4b2   :  { %v4600_v20 = vsel %vm69_vm3, %v4524_v61, 0.0 }
 0x4b3   :  { %v4601_v34 = vadd.f32 %v4600_v20, %v4599_v62 }
 0x4b4   :  { %v7584_v63 = vpop.f32.mrb[8].mxu1 }
 0x4b5   :  { %v4603_v0 = vadd.f32 %v4602_v35, %v4601_v34  ;;  %v4611_v1 = vsel %vm69_vm3, %v7584_v63, 0.0  ;;  %v7588_v3 = vpop.f32.mrb[9].mxu1 }
 0x4b6   :  { %v4610_v7 = vsel %vm69_vm3, %v7588_v3, 0.0 }
 0x4b7   :  { %v4604_v4 = vrot.slane %v4603_v0, 4  ;;  %v4612_v22 = vadd.f32 %v4611_v1, %v4610_v7 }
 0x4b8   :  { %v7592_v23 = vpop.f32.mrb[10].mxu1 }
 0x4b9   :  { %v4605_v10 = vadd.f32 %v4604_v4, %v4603_v0  ;;  %v7594_v11 = vpop.f32.mrb[11].mxu1  ;;  %v4615_v19 = vsel %vm69_vm3, %v7592_v23, 0.0 }
 0x4ba   :  { %v4613_v36 = vsel %vm69_vm3, %v7594_v11, 0.0 }
 0x4bb   :  { %v4606_v37 = vrot.slane %v4605_v10, 2  ;;  %v4614_v24 = vadd.f32 %v4613_v36, %v4612_v22 }
 0x4bc   :  { %v7600_v41 = vpop.f32.mrb[12].mxu1 }
 0x4bd   :  { %v4607_v8 = vadd.f32 %v4606_v37, %v4605_v10  ;;  %v4554_v42 = vpop.f32.mrb[13].mxu1  ;;  %v4616_v54 = vadd.f32 %v4615_v19, %v4614_v24  ;;  %v4619_v57 = vsel %vm69_vm3, %v7600_v41, 0.0 }
 0x4be   :  { %v4617_v55 = vsel %vm69_vm3, %v4554_v42, 0.0 }
 0x4bf   :  { %v4608_v17 = vrot.slane %v4607_v8, 1  ;;  %v4618_v18 = vadd.f32 %v4617_v55, %v4616_v54 }
 0x4c0   :  { %v5835_v47 = vpop.f32.mrb[14].mxu1 }
 0x4c1   :  { %v4609_v9 = vadd.f32 %v4608_v17, %v4607_v8  ;;  %v4564_v45 = vpop.f32.mrb[15].mxu1  ;;  %v4620_v51 = vadd.f32 %v4619_v57, %v4618_v18 }
 0x4c2   :  { %v4621_v52 = vsel %vm69_vm3, %v4564_v45, 0.0 }
 0x4c3   :  { %v4631_v15 = vmul.f32 0.015625, %v4609_v9  ;;  %v4622_v30 = vadd.f32 %v4621_v52, %v4620_v51 }
 0x4c5   :  { %v7606_v5 = vsub.f32 %v4494_v27, %v4631_v15  ;;  %v7608_v6 = vsub.f32 %v5814_v40, %v4631_v15  ;;  %v7610_v31 = vsub.f32 %v4504_v14, %v4631_v15  ;;  %v7612_v44 = vsub.f32 %v5817_v53, %v4631_v15 }
 0x4c6   :  { %v7614_v50 = vsub.f32 %v4514_v16, %v4631_v15  ;;  %v7616_v56 = vsub.f32 %v5820_v29, %v4631_v15  ;;  %v7618_v21 = vsub.f32 %v4524_v61, %v4631_v15  ;;  %v7620_v13 = vsub.f32 %v5823_v60, %v4631_v15 }
 0x4c7   :  { %v4649_v49 = vmul.f32 %v7606_v5, %v7606_v5  ;;  %v4650_v43 = vmul.f32 %v7608_v6, %v7608_v6  ;;  %v4651_v38 = vmul.f32 %v7610_v31, %v7610_v31  ;;  %v4652_v12 = vmul.f32 %v7612_v44, %v7612_v44 }
 0x4c8   :  { %v4623_v27 = vsel %vm69_vm3, %v5835_v47, 0.0  ;;  %v4653_v2 = vmul.f32 %v7614_v50, %v7614_v50  ;;  %v4654_v46 = vmul.f32 %v7616_v56, %v7616_v56  ;;  %v4655_v16 = vmul.f32 %v7618_v21, %v7618_v21 }
 0x4c9   :  { %v4665_v25 = vsel %vm69_vm3, %v4649_v49, 0.0  ;;  %v4666_v40 = vsel %vm69_vm3, %v4650_v43, 0.0  ;;  %v4668_v26 = vsel %vm69_vm3, %v4651_v38, 0.0  ;;  %v4624_v53 = vadd.f32 %v4623_v27, %v4622_v30 }
 0x4ca   :  { %v4667_v39 = vadd.f32 %v4666_v40, %v4665_v25  ;;  %v4670_v48 = vsel %vm69_vm3, %v4652_v12, 0.0  ;;  %v4672_v58 = vsel %vm69_vm3, %v4653_v2, 0.0  ;;  %v4656_v33 = vmul.f32 %v7620_v13, %v7620_v13 }
 0x4cb   :  { %v4625_v28 = vrot.slane %v4624_v53, 4  ;;  %v4674_v60 = vsel %vm69_vm3, %v4654_v46, 0.0  ;;  %v4676_v20 = vsel %vm69_vm3, %v4655_v16, 0.0 }
 0x4cc   :  { %v4669_v14 = vadd.f32 %v4668_v26, %v4667_v39  ;;  %v4678_v0 = vsel %vm69_vm3, %v4656_v33, 0.0 }
 0x4cd   :  { %v4626_v59 = vadd.f32 %v4625_v28, %v4624_v53 }
 0x4ce   :  { %v4671_v29 = vadd.f32 %v4670_v48, %v4669_v14 }
 0x4cf   :  { %v4627_v61 = vrot.slane %v4626_v59, 2 }
 0x4d0   :  { %v4673_v32 = vadd.f32 %v4672_v58, %v4671_v29 }
 0x4d1   :  { %v4628_v34 = vadd.f32 %v4627_v61, %v4626_v59 }
 0x4d2   :  { %v4675_v62 = vadd.f32 %v4674_v60, %v4673_v32 }
 0x4d3   :  { %v4629_v1 = vrot.slane %v4628_v34, 1 }
 0x4d4   :  { %v4677_v35 = vadd.f32 %v4676_v20, %v4675_v62 }
 0x4d5   :  { %v4630_v4 = vadd.f32 %v4629_v1, %v4628_v34 }
 0x4d6   :  { %v4679_v7 = vadd.f32 %v4678_v0, %v4677_v35 }
 0x4d7   :  { %v4632_v10 = vmul.f32 0.015625, %v4630_v4 }
 0x4d8   :  { %v4680_v22 = vrot.slane %v4679_v7, 4 }
 0x4d9   :  { %v7648_v37 = vsub.f32 %v7588_v3, %v4632_v10  ;;  %v7651_v24 = vsub.f32 %v7584_v63, %v4632_v10  ;;  %v7654_v19 = vsub.f32 %v7594_v11, %v4632_v10  ;;  %v7657_v8 = vsub.f32 %v7592_v23, %v4632_v10 }
 0x4da   :  { %v4681_v36 = vadd.f32 %v4680_v22, %v4679_v7  ;;  %v7659_v55 = vsub.f32 %v4554_v42, %v4632_v10  ;;  %v7662_v17 = vsub.f32 %v7600_v41, %v4632_v10  ;;  %v7664_v18 = vsub.f32 %v4564_v45, %v4632_v10 }
 0x4db   :  { %v7666_v57 = vsub.f32 %v5835_v47, %v4632_v10  ;;  %v4657_v63 = vmul.f32 %v7648_v37, %v7648_v37  ;;  %v4658_v3 = vmul.f32 %v7651_v24, %v7651_v24  ;;  %v4659_v23 = vmul.f32 %v7654_v19, %v7654_v19 }
 0x4dc   :  { %v4682_v54 = vrot.slane %v4681_v36, 2  ;;  %v4660_v42 = vmul.f32 %v7657_v8, %v7657_v8  ;;  %v4661_v51 = vmul.f32 %v7659_v55, %v7659_v55  ;;  %v4662_v49 = vmul.f32 %v7662_v17, %v7662_v17 }
 0x4dd   :  { %v4686_v41 = vsel %vm69_vm3, %v4657_v63, 0.0  ;;  %v4687_v9 = vsel %vm69_vm3, %v4658_v3, 0.0  ;;  %v4689_v52 = vsel %vm69_vm3, %v4659_v23, 0.0  ;;  %v4663_v25 = vmul.f32 %v7664_v18, %v7664_v18 }
 0x4de   :  { %v4683_v11 = vadd.f32 %v4682_v54, %v4681_v36  ;;  %v4688_v47 = vadd.f32 %v4687_v9, %v4686_v41  ;;  %v4691_v43 = vsel %vm69_vm3, %v4660_v42, 0.0  ;;  %v4693_v40 = vsel %vm69_vm3, %v4661_v51, 0.0 }
 0x4df   :  { %v4664_v2 = vmul.f32 %v7666_v57, %v7666_v57  ;;  %v4695_v26 = vsel %vm69_vm3, %v4662_v49, 0.0  ;;  %v4697_v14 = vsel %vm69_vm3, %v4663_v25, 0.0 }
 0x4e0   :  { %v4684_v45 = vrot.slane %v4683_v11, 1  ;;  %v4690_v30 = vadd.f32 %v4689_v52, %v4688_v47 }
 0x4e1   :  { %v4699_v48 = vsel %vm69_vm3, %v4664_v2, 0.0 }
 0x4e2   :  { %v4685_v15 = vadd.f32 %v4684_v45, %v4683_v11  ;;  %v4692_v12 = vadd.f32 %v4691_v43, %v4690_v30 }
 0x4e4   :  { %v4707_v38 = vmul.f32 0.015625, %v4685_v15  ;;  %v4694_v27 = vadd.f32 %v4693_v40, %v4692_v12 }
 0x4e6   :  { %v4709_v39 = vadd.f32 1e-05, %v4707_v38  ;;  %v4696_v53 = vadd.f32 %v4695_v26, %v4694_v27 }
 0x4e8   :  { %6098 = vrsqrt.f32 %v4709_v39  ;;  %v4698_v46 = vadd.f32 %v4697_v14, %v4696_v53 }
 0x4ea   :  { %v4700_v28 = vadd.f32 %v4699_v48, %v4698_v46 }
 0x4ec   :  { %v4701_v29 = vrot.slane %v4700_v28, 4 }
 0x4ee   :  { %v4702_v16 = vadd.f32 %v4701_v29, %v4700_v28 }
 0x4f0   :  { %v4703_v59 = vrot.slane %v4702_v16, 2 }
 0x4f2   :  { %v6099_v58 = vpop.eup %6098 }
 0x4f3   :  { %v4713_v32 = vmul.f32 %v6099_v58, %v7606_v5  ;;  %v4714_v33 = vmul.f32 %v6099_v58, %v7608_v6  ;;  %v4715_v60 = vmul.f32 %v6099_v58, %v7610_v31  ;;  %v4716_v61 = vmul.f32 %v6099_v58, %v7612_v44 }
 0x4f4   :  { %v4717_v62 = vmul.f32 %v6099_v58, %v7614_v50  ;;  %v4718_v20 = vmul.f32 %v6099_v58, %v7616_v56  ;;  %v4719_v34 = vmul.f32 %v6099_v58, %v7618_v21  ;;  %v4720_v35 = vmul.f32 %v6099_v58, %v7620_v13 }
 0x4f5   :  { %v4729_v0 = vmax.f32 %v4713_v32, 0.0  ;;  %v4730_v1 = vmax.f32 %v4714_v33, 0.0  ;;  %v4731_v7 = vmax.f32 %v4715_v60, 0.0  ;;  %v4732_v4 = vmax.f32 %v4716_v61, 0.0 }
 0x4f6   :  { %v4733_v22 = vmax.f32 %v4717_v62, 0.0  ;;  %v4734_v5 = vmax.f32 %v4718_v20, 0.0  ;;  %v4735_v10 = vmax.f32 %v4719_v34, 0.0  ;;  %v4736_v6 = vmax.f32 %v4720_v35, 0.0 }
 0x4f7   :  { %4745 = vst.msk [vmem:[%s7775_s3] sm:$0xff] %vm69_vm3, %v4729_v0  ;;  %4746 = vst.msk [vmem:[%s7775_s3 + $0x8] sm:$0xff] %vm69_vm3, %v4730_v1  ;;  %v4704_v31 = vadd.f32 %v4703_v59, %v4702_v16 }
 0x4f8   :  { %4747 = vst.msk [vmem:[%s7775_s3 + $0x10] sm:$0xff] %vm69_vm3, %v4731_v7  ;;  %4748 = vst.msk [vmem:[%s7775_s3 + $0x18] sm:$0xff] %vm69_vm3, %v4732_v4 }
 0x4f9   :  { %4749 = vst.msk [vmem:[%s7775_s3 + $0x20] sm:$0xff] %vm69_vm3, %v4733_v22  ;;  %4750 = vst.msk [vmem:[%s7775_s3 + $0x28] sm:$0xff] %vm69_vm3, %v4734_v5  ;;  %v4705_v44 = vrot.slane %v4704_v31, 1 }
 0x4fa   :  { %4751 = vst.msk [vmem:[%s7775_s3 + $0x30] sm:$0xff] %vm69_vm3, %v4735_v10  ;;  %4752 = vst.msk [vmem:[%s7775_s3 + $0x38] sm:$0xff] %vm69_vm3, %v4736_v6 }
 0x4fb   :  { %v4706_v50 = vadd.f32 %v4705_v44, %v4704_v31 }
 0x4fd   :  { %v4708_v56 = vmul.f32 0.015625, %v4706_v50 }
 0x4ff   :  { %v4710_v21 = vadd.f32 1e-05, %v4708_v56 }
 0x501   :  { %6100 = vrsqrt.f32 %v4710_v21 }
 0x50b   :  { %v6101_v13 = vpop.eup %6100 }
 0x50c   :  { %v4721_v36 = vmul.f32 %v6101_v13, %v7648_v37  ;;  %v4722_v54 = vmul.f32 %v6101_v13, %v7651_v24  ;;  %v4723_v63 = vmul.f32 %v6101_v13, %v7654_v19  ;;  %v4724_v3 = vmul.f32 %v6101_v13, %v7657_v8 }
 0x50d   :  { %v4725_v23 = vmul.f32 %v6101_v13, %v7659_v55  ;;  %v4726_v11 = vmul.f32 %v6101_v13, %v7662_v17  ;;  %v4727_v42 = vmul.f32 %v6101_v13, %v7664_v18  ;;  %v4728_v41 = vmul.f32 %v6101_v13, %v7666_v57 }
 0x50e   :  { %v4737_v9 = vmax.f32 %v4721_v36, 0.0  ;;  %v4738_v45 = vmax.f32 %v4722_v54, 0.0  ;;  %v4739_v47 = vmax.f32 %v4723_v63, 0.0  ;;  %v4740_v51 = vmax.f32 %v4724_v3, 0.0 }
 0x50f   :  { %v4741_v52 = vmax.f32 %v4725_v23, 0.0  ;;  %v4742_v37 = vmax.f32 %v4726_v11, 0.0  ;;  %v4743_v15 = vmax.f32 %v4727_v42, 0.0  ;;  %v4744_v24 = vmax.f32 %v4728_v41, 0.0 }
 0x510   :  { %4753 = vst.msk [vmem:[%s7775_s3 + $0x40] sm:$0xff] %vm69_vm3, %v4737_v9  ;;  %4754 = vst.msk [vmem:[%s7775_s3 + $0x48] sm:$0xff] %vm69_vm3, %v4738_v45 }
 0x511   :  { %4755 = vst.msk [vmem:[%s7775_s3 + $0x50] sm:$0xff] %vm69_vm3, %v4739_v47  ;;  %4756 = vst.msk [vmem:[%s7775_s3 + $0x58] sm:$0xff] %vm69_vm3, %v4740_v51 }
 0x512   :  { %4757 = vst.msk [vmem:[%s7775_s3 + $0x60] sm:$0xff] %vm69_vm3, %v4741_v52  ;;  %4758 = vst.msk [vmem:[%s7775_s3 + $0x68] sm:$0xff] %vm69_vm3, %v4742_v37 }
 0x513   :  { %4759 = vst.msk [vmem:[%s7775_s3 + $0x70] sm:$0xff] %vm69_vm3, %v4743_v15  ;;  %4760 = vst.msk [vmem:[%s7775_s3 + $0x78] sm:$0xff] %vm69_vm3, %v4744_v24 }

</bundles_post_ra>
